<compile_context>
chip_gen: v7x
topology: tpu7x:2x2x1
jax: 0.10.0
libtpu: 0.0.40
codegen_flags: <defaults>
</compile_context>

<pallas_src>
import math
from functools import partial

import jax
import jax.numpy as jnp
from jax.experimental import pallas as pl
from jax.experimental.pallas import tpu as pltpu

# ----------------------------------------------------------------------------
# Problem / model configuration (synthetic "problem" object from Model.__init__)
# ----------------------------------------------------------------------------
PROBLEM_DIM = 3            # problem.dim
INTERVAL = (0.0, 1.0)      # problem.interval
TERMINAL_TIME = 1.0        # problem.terminal_time
FACTOR = 5                 # MultilevelNet factor
LEVELS = 4                 # MultilevelNet levels

DIM_IN = PROBLEM_DIM + 1            # Model.dim_in
DIM_OUT = 1                         # Model.dim_out (grad_model=False)
HIDDEN = FACTOR * DIM_IN            # LevelNet width = 20

MEAN = [sum(INTERVAL) / 2.0, TERMINAL_TIME / 2.0]
STD = [(INTERVAL[1] - INTERVAL[0]) / math.sqrt(12.0),
       TERMINAL_TIME / math.sqrt(12.0)]

# packed-parameter bookkeeping
N_HID = sum(2 ** lv - 1 for lv in range(LEVELS))      # 11 hidden (20,20) layers
HID_OFF = []
_off = 0
for _lv in range(LEVELS):
    HID_OFF.append(_off)
    _off += 2 ** _lv - 1
# max number of wide (HIDDEN,) residual tensors any level produces
MAX_WIDE = max(1, 2 ** (LEVELS - 2) - 1) if LEVELS >= 2 else 1   # = 3


def _check_inplace_reuse():
    """The kernel reuses res_wide slots in place across levels; statically
    verify the "write slot was already read" invariant and the capacity."""
    for lv in reversed(range(LEVELS)):
        n = 2 ** lv
        written = 0
        for i in range(n):
            if lv < LEVELS - 1 and i < n - 1:
                # step i reads slot i -> must not have been overwritten yet
                assert written <= i, "res_wide slot clobbered before read"
            if (i % 2 == 1 or lv == 0) and i < n - 1:
                assert written < MAX_WIDE, "res_wide scratch too small"
                written += 1


_check_inplace_reuse()


# ----------------------------------------------------------------------------
# Deterministic parameter init (PyTorch Linear-style uniform(-1/sqrt(fan_in),.))
# ----------------------------------------------------------------------------
def _init_linear(key, fan_in, fan_out):
    kw, kb = jax.random.split(key)
    bound = 1.0 / math.sqrt(fan_in)
    w = jax.random.uniform(kw, (fan_in, fan_out), jnp.float32, -bound, bound)
    b = jax.random.uniform(kb, (1, fan_out), jnp.float32, -bound, bound)
    return w, b


def init_params(key):
    """Per level: first dense (DIM_IN,HIDDEN), 2^lv-1 hidden (HIDDEN,HIDDEN),
    output (HIDDEN, DIM_OUT)."""
    params = []
    for level in range(LEVELS):
        key, k0 = jax.random.split(key)
        w0, b0 = _init_linear(k0, DIM_IN, HIDDEN)
        hidden = []
        for _ in range(2 ** level - 1):
            key, kh = jax.random.split(key)
            hidden.append(_init_linear(kh, HIDDEN, HIDDEN))
        key, ko = jax.random.split(key)
        wout, bout = _init_linear(ko, HIDDEN, DIM_OUT)
        params.append(dict(W0=w0, b0=b0, hidden=hidden, Wout=wout, bout=bout))
    return params


def pack_params(params, compute_dtype=jnp.float32):
    """Consolidate the ~40 per-layer arrays into 6 packed, pre-transposed
    buffers (kernel computes h = W^T @ h, batch on the lane axis).

    The standardisation (x-mean)/std of Model.standardize_and_flatten is folded
    algebraically into the first-dense weights/biases:
        W0_eff = W0^T * (1/std)   (per input column)
        b0_eff = b0^T - W0_eff @ mean
    Weights are cast to compute_dtype (bf16 knob for v6e/v7x); biases stay f32
    because they are added to f32-accumulated matmul results."""
    mean_col = jnp.array([MEAN[0]] * PROBLEM_DIM + [MEAN[1]],
                         jnp.float32)[:, None]                     # (DIM_IN, 1)
    inv_std_row = jnp.array([1.0 / STD[0]] * PROBLEM_DIM + [1.0 / STD[1]],
                            jnp.float32)[None, :]                  # (1, DIM_IN)

    w0_list, b0_list = [], []
    for p in params:
        w0_t = p['W0'].T * inv_std_row                             # (HIDDEN, DIM_IN)
        b0_t = p['b0'].T - w0_t @ mean_col                         # (HIDDEN, 1)
        w0_list.append(w0_t)
        b0_list.append(b0_t)
    w0 = jnp.stack(w0_list, 0).astype(compute_dtype)               # (L, H, DIM_IN)
    b0 = jnp.stack(b0_list, 0)                                     # (L, H, 1) f32

    wh = jnp.stack([w.T for p in params for (w, _) in p['hidden']], 0
                   ).astype(compute_dtype)                         # (N_HID, H, H)
    bh = jnp.stack([b.T for p in params for (_, b) in p['hidden']], 0)  # (N_HID, H, 1)
    wo = jnp.stack([p['Wout'].T for p in params], 0).astype(compute_dtype)  # (L, 1, H)
    bo = jnp.stack([p['bout'].T for p in params], 0)               # (L, 1, 1)
    return w0, b0, wh, bh, wo, bo


# ----------------------------------------------------------------------------
# Pallas kernel: one batch tile per grid step, all params VMEM-resident,
# activations carried batch-in-lanes as (HIDDEN, btile).
# ----------------------------------------------------------------------------
def kernel(inp_ref, w0_ref, b0_ref, wh_ref, bh_ref, wo_ref, bo_ref,
           o_ref, res_wide, *, compute_dtype):
    # inp_ref: (DIM_IN, btile); standardisation is folded into w0/b0.
    xs = inp_ref[...].astype(compute_dtype)

    res_narrow = None                               # (1, btile) residual chain
    for lv in reversed(range(LEVELS)):              # level L-1 ... 0
        n = 2 ** lv
        # level-lv first dense: (HIDDEN, DIM_IN) @ (DIM_IN, btile)
        h = (jnp.dot(w0_ref[lv], xs, preferred_element_type=jnp.float32)
             + b0_ref[lv])                          # (HIDDEN, btile) f32
        wide_written = 0
        for i in range(n):
            a = jnp.tanh(h.astype(compute_dtype))   # act before every dense i>=1
            if i < n - 1:                           # hidden (HIDDEN,HIDDEN) layer
                j = HID_OFF[lv] + i
                h = (jnp.dot(wh_ref[j], a, preferred_element_type=jnp.float32)
                     + bh_ref[j])                   # (HIDDEN, btile)
            else:                                   # output (DIM_OUT, HIDDEN) layer
                h = (jnp.dot(wo_ref[lv], a, preferred_element_type=jnp.float32)
                     + bo_ref[lv])                  # (1, btile) lane-dense
            if lv < LEVELS - 1:                     # residual from level lv+1
                h = h + (res_wide[i] if i < n - 1 else res_narrow)
            if i % 2 == 1 or lv == 0:               # collect out_tensors
                if i < n - 1:
                    # safe in-place reuse: slot `wide_written` < i was already read
                    res_wide[wide_written] = h
                    wide_written += 1
                else:
                    res_narrow = h                  # (1, btile)
    # MultilevelNet returns res_tensors[-1]; lane-dense unmasked store.
    o_ref[...] = res_narrow.astype(o_ref.dtype)


def _round_up(v, m):
    return ((v + m - 1) // m) * m


def multilevel_net(x, t, params, *, btile=2048, use_bf16=False):
    """Forward pass of MultilevelNet.

    btile: batch rows per grid step (kept a multiple of 128). 2048 amortises
    the per-step overhead and fits comfortably in every generation's scoped
    VMEM default (including v5e's 16 MiB: inputs + res_wide + out < 1 MiB).
    use_bf16: bf16 weights + tanh inputs (f32 accumulation / residual chain);
    recommended on v6e/v7x, leave False on v5e (no bf16 VPU/EUP).
    """
    B = x.shape[0]
    compute_dtype = jnp.bfloat16 if use_bf16 else jnp.float32

    # Keep >=2 grid steps when the batch allows it (v7x has 2 TensorCores and
    # the batch axis is "parallel"); never tile wider than the rounded batch.
    btile = int(min(btile, max(128, _round_up(pl.cdiv(B, 2), 128))))
    b_pad = _round_up(B, btile)

    # Transposed, fused input (batch on lanes): rows 0..2 are x, row 3 is t.
    inp = jnp.concatenate([x, t], axis=1).T                        # (DIM_IN, B)
    if b_pad != B:
        inp = jnp.pad(inp, ((0, 0), (0, b_pad - B)))

    packed = pack_params(params, compute_dtype)
    param_bytes = sum(int(p.size) * p.dtype.itemsize for p in packed)

    flops_per_row = (LEVELS * (2 * DIM_IN * HIDDEN + 2 * HIDDEN * DIM_OUT)
                     + N_HID * 2 * HIDDEN * HIDDEN)
    trans_per_row = sum(2 ** lv for lv in range(LEVELS)) * HIDDEN  # tanh evals

    const3 = lambda i: (0, 0, 0)
    out = pl.pallas_call(
        partial(kernel, compute_dtype=compute_dtype),
        out_shape=jax.ShapeDtypeStruct((1, b_pad), jnp.float32),
        grid_spec=pltpu.PrefetchScalarGridSpec(
            num_scalar_prefetch=0,
            grid=(b_pad // btile,),
            in_specs=[
                pl.BlockSpec((DIM_IN, btile), lambda i: (0, i)),        # input
                pl.BlockSpec((LEVELS, HIDDEN, DIM_IN), const3),         # W0^T (std folded)
                pl.BlockSpec((LEVELS, HIDDEN, 1), const3),              # b0^T
                pl.BlockSpec((N_HID, HIDDEN, HIDDEN), const3),          # Wh^T
                pl.BlockSpec((N_HID, HIDDEN, 1), const3),               # bh^T
                pl.BlockSpec((LEVELS, DIM_OUT, HIDDEN), const3),        # Wout^T
                pl.BlockSpec((LEVELS, DIM_OUT, 1), const3),             # bout^T
            ],
            out_specs=pl.BlockSpec((1, btile), lambda i: (0, i)),       # lane-dense
            scratch_shapes=[pltpu.VMEM((MAX_WIDE, HIDDEN, btile), jnp.float32)],
        ),
        compiler_params=pltpu.CompilerParams(
            dimension_semantics=("parallel",)),
        cost_estimate=pl.CostEstimate(
            flops=int(flops_per_row * b_pad),
            transcendentals=int(trans_per_row * b_pad),
            bytes_accessed=int((DIM_IN + DIM_OUT) * 4 * b_pad + param_bytes)),
    )(inp, *packed)
    return out[0, :B].reshape(B, DIM_OUT)
    # TODO(synk): activation_factory is a constructor arg; tanh assumed.
    # normalization_factory=None path only (Linear bias on, no norm layers).


# ----------------------------------------------------------------------------
# Pure-JAX reference (mirrors the PyTorch forward) for a sanity check.
# ----------------------------------------------------------------------------
def reference(x, t, params):
    xs = (x - MEAN[0]) / STD[0]
    ts = (t - MEAN[1]) / STD[1]
    inp = jnp.concatenate([xs, ts], axis=1)
    res = None
    for lv in reversed(range(LEVELS)):
        p = params[lv]
        h = inp @ p['W0'] + p['b0']
        layers = list(p['hidden']) + [(p['Wout'], p['bout'])]
        outs = []
        for i, (w, b) in enumerate(layers):
            h = jnp.tanh(h)
            h = h @ w + b
            if res is not None:
                h = h + res[i]
            if i % 2 == 1 or lv == 0:
                outs.append(h)
        res = outs
    return res[-1]


if __name__ == "__main__":
    key = jax.random.PRNGKey(0)
    kp, kx, kt = jax.random.split(key, 3)

    params = init_params(kp)
    batch = 192   # not a multiple of 128 -> exercises pad/slice + 2-step grid
    x = jax.random.uniform(kx, (batch, PROBLEM_DIM), jnp.float32,
                           INTERVAL[0], INTERVAL[1])
    t = jax.random.uniform(kt, (batch, 1), jnp.float32, 0.0, TERMINAL_TIME)

    out = jax.block_until_ready(multilevel_net(x, t, params))
    ref = reference(x, t, params)
    assert out.shape == (batch, DIM_OUT)
    assert jnp.allclose(out, ref, atol=1e-3, rtol=1e-3), (out[:4], ref[:4])
    print("KERNEL_OK")
</pallas_src>

<mosaic_0001>
module attributes {stable_mosaic.version = 11 : i64} {
  func.func @kernel(%arg0: i32, %arg1: memref<4x128xf32, #tpu.memory_space<vmem>>, %arg2: memref<4x20x4xf32, #tpu.memory_space<vmem>>, %arg3: memref<4x20x1xf32, #tpu.memory_space<vmem>>, %arg4: memref<11x20x20xf32, #tpu.memory_space<vmem>>, %arg5: memref<11x20x1xf32, #tpu.memory_space<vmem>>, %arg6: memref<4x1x20xf32, #tpu.memory_space<vmem>>, %arg7: memref<4x1x1xf32, #tpu.memory_space<vmem>>, %arg8: memref<1x128xf32, #tpu.memory_space<vmem>>, %arg9: memref<3x20x128xf32, #tpu.memory_space<vmem>>) attributes {dimension_semantics = [#tpu.dimension_semantics<parallel>], iteration_bounds = array<i64: 2>, scalar_prefetch = 0 : i64, scratch_operands = 1 : i64, tpu.core_type = #tpu.core_type<tc>, window_params = [{transform_indices = @transform_0, window_bounds = array<i64: 4, 128>}, {pipeline_mode = #tpu.pipeline_mode<synchronous>, transform_indices = @transform_1, window_bounds = array<i64: 4, 20, 4>}, {pipeline_mode = #tpu.pipeline_mode<synchronous>, transform_indices = @transform_2, window_bounds = array<i64: 4, 20, 1>}, {pipeline_mode = #tpu.pipeline_mode<synchronous>, transform_indices = @transform_3, window_bounds = array<i64: 11, 20, 20>}, {pipeline_mode = #tpu.pipeline_mode<synchronous>, transform_indices = @transform_4, window_bounds = array<i64: 11, 20, 1>}, {pipeline_mode = #tpu.pipeline_mode<synchronous>, transform_indices = @transform_5, window_bounds = array<i64: 4, 1, 20>}, {pipeline_mode = #tpu.pipeline_mode<synchronous>, transform_indices = @transform_6, window_bounds = array<i64: 4, 1, 1>}, {transform_indices = @transform_7, window_bounds = array<i64: 1, 128>}]} {
    %c0 = arith.constant 0 : index
    %c0_0 = arith.constant 0 : index
    %0 = vector.load %arg1[%c0, %c0_0] : memref<4x128xf32, #tpu.memory_space<vmem>>, vector<4x128xf32>
    %c3 = arith.constant 3 : index
    %c0_1 = arith.constant 0 : index
    %c0_2 = arith.constant 0 : index
    %1 = vector.load %arg2[%c3, %c0_1, %c0_2] : memref<4x20x4xf32, #tpu.memory_space<vmem>>, vector<1x20x4xf32>
    %2 = vector.shape_cast %1 : vector<1x20x4xf32> to vector<20x4xf32>
    %cst = arith.constant dense<0.000000e+00> : vector<20x128xf32>
    %3 = tpu.matmul %2, %0, %cst {dimension_numbers = #tpu.dot_dimension_numbers<[1], [0], [0], [1], [0, 0, 1, 1], [], []>} : vector<20x4xf32>, vector<4x128xf32>, vector<20x128xf32> -> vector<20x128xf32>
    %c3_3 = arith.constant 3 : index
    %c0_4 = arith.constant 0 : index
    %c0_5 = arith.constant 0 : index
    %4 = vector.load %arg3[%c3_3, %c0_4, %c0_5] : memref<4x20x1xf32, #tpu.memory_space<vmem>>, vector<1x20x1xf32>
    %5 = vector.shape_cast %4 : vector<1x20x1xf32> to vector<20x1xf32>
    %6 = vector.broadcast %5 : vector<20x1xf32> to vector<20x128xf32>
    %7 = arith.addf %3, %6 : vector<20x128xf32>
    %8 = math.tanh %7 : vector<20x128xf32>
    %c4 = arith.constant 4 : index
    %c0_6 = arith.constant 0 : index
    %c0_7 = arith.constant 0 : index
    %9 = vector.load %arg4[%c4, %c0_6, %c0_7] : memref<11x20x20xf32, #tpu.memory_space<vmem>>, vector<1x20x20xf32>
    %10 = vector.shape_cast %9 : vector<1x20x20xf32> to vector<20x20xf32>
    %cst_8 = arith.constant dense<0.000000e+00> : vector<20x128xf32>
    %11 = tpu.matmul %10, %8, %cst_8 {dimension_numbers = #tpu.dot_dimension_numbers<[1], [0], [0], [1], [0, 0, 1, 1], [], []>} : vector<20x20xf32>, vector<20x128xf32>, vector<20x128xf32> -> vector<20x128xf32>
    %c4_9 = arith.constant 4 : index
    %c0_10 = arith.constant 0 : index
    %c0_11 = arith.constant 0 : index
    %12 = vector.load %arg5[%c4_9, %c0_10, %c0_11] : memref<11x20x1xf32, #tpu.memory_space<vmem>>, vector<1x20x1xf32>
    %13 = vector.shape_cast %12 : vector<1x20x1xf32> to vector<20x1xf32>
    %14 = vector.broadcast %13 : vector<20x1xf32> to vector<20x128xf32>
    %15 = arith.addf %11, %14 : vector<20x128xf32>
    %16 = math.tanh %15 : vector<20x128xf32>
    %c5 = arith.constant 5 : index
    %c0_12 = arith.constant 0 : index
    %c0_13 = arith.constant 0 : index
    %17 = vector.load %arg4[%c5, %c0_12, %c0_13] : memref<11x20x20xf32, #tpu.memory_space<vmem>>, vector<1x20x20xf32>
    %18 = vector.shape_cast %17 : vector<1x20x20xf32> to vector<20x20xf32>
    %cst_14 = arith.constant dense<0.000000e+00> : vector<20x128xf32>
    %19 = tpu.matmul %18, %16, %cst_14 {dimension_numbers = #tpu.dot_dimension_numbers<[1], [0], [0], [1], [0, 0, 1, 1], [], []>} : vector<20x20xf32>, vector<20x128xf32>, vector<20x128xf32> -> vector<20x128xf32>
    %c5_15 = arith.constant 5 : index
    %c0_16 = arith.constant 0 : index
    %c0_17 = arith.constant 0 : index
    %20 = vector.load %arg5[%c5_15, %c0_16, %c0_17] : memref<11x20x1xf32, #tpu.memory_space<vmem>>, vector<1x20x1xf32>
    %21 = vector.shape_cast %20 : vector<1x20x1xf32> to vector<20x1xf32>
    %22 = vector.broadcast %21 : vector<20x1xf32> to vector<20x128xf32>
    %23 = arith.addf %19, %22 : vector<20x128xf32>
    %c0_18 = arith.constant 0 : index
    %c0_19 = arith.constant 0 : index
    %c0_20 = arith.constant 0 : index
    %24 = vector.load %arg9[%c0_18, %c0_19, %c0_20] : memref<3x20x128xf32, #tpu.memory_space<vmem>>, vector<1x20x128xf32>
    %25 = vector.shape_cast %24 : vector<1x20x128xf32> to vector<20x128xf32>
    %26 = vector.shape_cast %23 : vector<20x128xf32> to vector<1x20x128xf32>
    tpu.vector_store %arg9[%c0_18, %c0_19, %c0_20], %26 {strides = array<i32>} : memref<3x20x128xf32, #tpu.memory_space<vmem>>, vector<1x20x128xf32>,
    %27 = math.tanh %23 : vector<20x128xf32>
    %c6 = arith.constant 6 : index
    %c0_21 = arith.constant 0 : index
    %c0_22 = arith.constant 0 : index
    %28 = vector.load %arg4[%c6, %c0_21, %c0_22] : memref<11x20x20xf32, #tpu.memory_space<vmem>>, vector<1x20x20xf32>
    %29 = vector.shape_cast %28 : vector<1x20x20xf32> to vector<20x20xf32>
    %cst_23 = arith.constant dense<0.000000e+00> : vector<20x128xf32>
    %30 = tpu.matmul %29, %27, %cst_23 {dimension_numbers = #tpu.dot_dimension_numbers<[1], [0], [0], [1], [0, 0, 1, 1], [], []>} : vector<20x20xf32>, vector<20x128xf32>, vector<20x128xf32> -> vector<20x128xf32>
    %c6_24 = arith.constant 6 : index
    %c0_25 = arith.constant 0 : index
    %c0_26 = arith.constant 0 : index
    %31 = vector.load %arg5[%c6_24, %c0_25, %c0_26] : memref<11x20x1xf32, #tpu.memory_space<vmem>>, vector<1x20x1xf32>
    %32 = vector.shape_cast %31 : vector<1x20x1xf32> to vector<20x1xf32>
    %33 = vector.broadcast %32 : vector<20x1xf32> to vector<20x128xf32>
    %34 = arith.addf %30, %33 : vector<20x128xf32>
    %35 = math.tanh %34 : vector<20x128xf32>
    %c7 = arith.constant 7 : index
    %c0_27 = arith.constant 0 : index
    %c0_28 = arith.constant 0 : index
    %36 = vector.load %arg4[%c7, %c0_27, %c0_28] : memref<11x20x20xf32, #tpu.memory_space<vmem>>, vector<1x20x20xf32>
    %37 = vector.shape_cast %36 : vector<1x20x20xf32> to vector<20x20xf32>
    %cst_29 = arith.constant dense<0.000000e+00> : vector<20x128xf32>
    %38 = tpu.matmul %37, %35, %cst_29 {dimension_numbers = #tpu.dot_dimension_numbers<[1], [0], [0], [1], [0, 0, 1, 1], [], []>} : vector<20x20xf32>, vector<20x128xf32>, vector<20x128xf32> -> vector<20x128xf32>
    %c7_30 = arith.constant 7 : index
    %c0_31 = arith.constant 0 : index
    %c0_32 = arith.constant 0 : index
    %39 = vector.load %arg5[%c7_30, %c0_31, %c0_32] : memref<11x20x1xf32, #tpu.memory_space<vmem>>, vector<1x20x1xf32>
    %40 = vector.shape_cast %39 : vector<1x20x1xf32> to vector<20x1xf32>
    %41 = vector.broadcast %40 : vector<20x1xf32> to vector<20x128xf32>
    %42 = arith.addf %38, %41 : vector<20x128xf32>
    %c1 = arith.constant 1 : index
    %c0_33 = arith.constant 0 : index
    %c0_34 = arith.constant 0 : index
    %43 = vector.load %arg9[%c1, %c0_33, %c0_34] : memref<3x20x128xf32, #tpu.memory_space<vmem>>, vector<1x20x128xf32>
    %44 = vector.shape_cast %43 : vector<1x20x128xf32> to vector<20x128xf32>
    %45 = vector.shape_cast %42 : vector<20x128xf32> to vector<1x20x128xf32>
    tpu.vector_store %arg9[%c1, %c0_33, %c0_34], %45 {strides = array<i32>} : memref<3x20x128xf32, #tpu.memory_space<vmem>>, vector<1x20x128xf32>,
    %46 = math.tanh %42 : vector<20x128xf32>
    %c8 = arith.constant 8 : index
    %c0_35 = arith.constant 0 : index
    %c0_36 = arith.constant 0 : index
    %47 = vector.load %arg4[%c8, %c0_35, %c0_36] : memref<11x20x20xf32, #tpu.memory_space<vmem>>, vector<1x20x20xf32>
    %48 = vector.shape_cast %47 : vector<1x20x20xf32> to vector<20x20xf32>
    %cst_37 = arith.constant dense<0.000000e+00> : vector<20x128xf32>
    %49 = tpu.matmul %48, %46, %cst_37 {dimension_numbers = #tpu.dot_dimension_numbers<[1], [0], [0], [1], [0, 0, 1, 1], [], []>} : vector<20x20xf32>, vector<20x128xf32>, vector<20x128xf32> -> vector<20x128xf32>
    %c8_38 = arith.constant 8 : index
    %c0_39 = arith.constant 0 : index
    %c0_40 = arith.constant 0 : index
    %50 = vector.load %arg5[%c8_38, %c0_39, %c0_40] : memref<11x20x1xf32, #tpu.memory_space<vmem>>, vector<1x20x1xf32>
    %51 = vector.shape_cast %50 : vector<1x20x1xf32> to vector<20x1xf32>
    %52 = vector.broadcast %51 : vector<20x1xf32> to vector<20x128xf32>
    %53 = arith.addf %49, %52 : vector<20x128xf32>
    %54 = math.tanh %53 : vector<20x128xf32>
    %c9 = arith.constant 9 : index
    %c0_41 = arith.constant 0 : index
    %c0_42 = arith.constant 0 : index
    %55 = vector.load %arg4[%c9, %c0_41, %c0_42] : memref<11x20x20xf32, #tpu.memory_space<vmem>>, vector<1x20x20xf32>
    %56 = vector.shape_cast %55 : vector<1x20x20xf32> to vector<20x20xf32>
    %cst_43 = arith.constant dense<0.000000e+00> : vector<20x128xf32>
    %57 = tpu.matmul %56, %54, %cst_43 {dimension_numbers = #tpu.dot_dimension_numbers<[1], [0], [0], [1], [0, 0, 1, 1], [], []>} : vector<20x20xf32>, vector<20x128xf32>, vector<20x128xf32> -> vector<20x128xf32>
    %c9_44 = arith.constant 9 : index
    %c0_45 = arith.constant 0 : index
    %c0_46 = arith.constant 0 : index
    %58 = vector.load %arg5[%c9_44, %c0_45, %c0_46] : memref<11x20x1xf32, #tpu.memory_space<vmem>>, vector<1x20x1xf32>
    %59 = vector.shape_cast %58 : vector<1x20x1xf32> to vector<20x1xf32>
    %60 = vector.broadcast %59 : vector<20x1xf32> to vector<20x128xf32>
    %61 = arith.addf %57, %60 : vector<20x128xf32>
    %c2 = arith.constant 2 : index
    %c0_47 = arith.constant 0 : index
    %c0_48 = arith.constant 0 : index
    %62 = vector.load %arg9[%c2, %c0_47, %c0_48] : memref<3x20x128xf32, #tpu.memory_space<vmem>>, vector<1x20x128xf32>
    %63 = vector.shape_cast %62 : vector<1x20x128xf32> to vector<20x128xf32>
    %64 = vector.shape_cast %61 : vector<20x128xf32> to vector<1x20x128xf32>
    tpu.vector_store %arg9[%c2, %c0_47, %c0_48], %64 {strides = array<i32>} : memref<3x20x128xf32, #tpu.memory_space<vmem>>, vector<1x20x128xf32>,
    %65 = math.tanh %61 : vector<20x128xf32>
    %c10 = arith.constant 10 : index
    %c0_49 = arith.constant 0 : index
    %c0_50 = arith.constant 0 : index
    %66 = vector.load %arg4[%c10, %c0_49, %c0_50] : memref<11x20x20xf32, #tpu.memory_space<vmem>>, vector<1x20x20xf32>
    %67 = vector.shape_cast %66 : vector<1x20x20xf32> to vector<20x20xf32>
    %cst_51 = arith.constant dense<0.000000e+00> : vector<20x128xf32>
    %68 = tpu.matmul %67, %65, %cst_51 {dimension_numbers = #tpu.dot_dimension_numbers<[1], [0], [0], [1], [0, 0, 1, 1], [], []>} : vector<20x20xf32>, vector<20x128xf32>, vector<20x128xf32> -> vector<20x128xf32>
    %c10_52 = arith.constant 10 : index
    %c0_53 = arith.constant 0 : index
    %c0_54 = arith.constant 0 : index
    %69 = vector.load %arg5[%c10_52, %c0_53, %c0_54] : memref<11x20x1xf32, #tpu.memory_space<vmem>>, vector<1x20x1xf32>
    %70 = vector.shape_cast %69 : vector<1x20x1xf32> to vector<20x1xf32>
    %71 = vector.broadcast %70 : vector<20x1xf32> to vector<20x128xf32>
    %72 = arith.addf %68, %71 : vector<20x128xf32>
    %73 = math.tanh %72 : vector<20x128xf32>
    %c3_55 = arith.constant 3 : index
    %c0_56 = arith.constant 0 : index
    %c0_57 = arith.constant 0 : index
    %74 = vector.load %arg6[%c3_55, %c0_56, %c0_57] : memref<4x1x20xf32, #tpu.memory_space<vmem>>, vector<1x1x20xf32>
    %75 = vector.shape_cast %74 : vector<1x1x20xf32> to vector<1x20xf32>
    %cst_58 = arith.constant dense<0.000000e+00> : vector<1x128xf32>
    %76 = tpu.matmul %75, %73, %cst_58 {dimension_numbers = #tpu.dot_dimension_numbers<[1], [0], [0], [1], [0, 0, 1, 1], [], []>} : vector<1x20xf32>, vector<20x128xf32>, vector<1x128xf32> -> vector<1x128xf32>
    %c3_59 = arith.constant 3 : index
    %c0_60 = arith.constant 0 : index
    %c0_61 = arith.constant 0 : index
    %77 = vector.load %arg7[%c3_59, %c0_60, %c0_61] : memref<4x1x1xf32, #tpu.memory_space<vmem>>, vector<1x1x1xf32>
    %78 = vector.shape_cast %77 : vector<1x1x1xf32> to vector<1x1xf32>
    %79 = vector.broadcast %78 : vector<1x1xf32> to vector<1x128xf32>
    %80 = arith.addf %76, %79 : vector<1x128xf32>
    %c2_62 = arith.constant 2 : index
    %c0_63 = arith.constant 0 : index
    %c0_64 = arith.constant 0 : index
    %81 = vector.load %arg2[%c2_62, %c0_63, %c0_64] : memref<4x20x4xf32, #tpu.memory_space<vmem>>, vector<1x20x4xf32>
    %82 = vector.shape_cast %81 : vector<1x20x4xf32> to vector<20x4xf32>
    %cst_65 = arith.constant dense<0.000000e+00> : vector<20x128xf32>
    %83 = tpu.matmul %82, %0, %cst_65 {dimension_numbers = #tpu.dot_dimension_numbers<[1], [0], [0], [1], [0, 0, 1, 1], [], []>} : vector<20x4xf32>, vector<4x128xf32>, vector<20x128xf32> -> vector<20x128xf32>
    %c2_66 = arith.constant 2 : index
    %c0_67 = arith.constant 0 : index
    %c0_68 = arith.constant 0 : index
    %84 = vector.load %arg3[%c2_66, %c0_67, %c0_68] : memref<4x20x1xf32, #tpu.memory_space<vmem>>, vector<1x20x1xf32>
    %85 = vector.shape_cast %84 : vector<1x20x1xf32> to vector<20x1xf32>
    %86 = vector.broadcast %85 : vector<20x1xf32> to vector<20x128xf32>
    %87 = arith.addf %83, %86 : vector<20x128xf32>
    %88 = math.tanh %87 : vector<20x128xf32>
    %c1_69 = arith.constant 1 : index
    %c0_70 = arith.constant 0 : index
    %c0_71 = arith.constant 0 : index
    %89 = vector.load %arg4[%c1_69, %c0_70, %c0_71] : memref<11x20x20xf32, #tpu.memory_space<vmem>>, vector<1x20x20xf32>
    %90 = vector.shape_cast %89 : vector<1x20x20xf32> to vector<20x20xf32>
    %cst_72 = arith.constant dense<0.000000e+00> : vector<20x128xf32>
    %91 = tpu.matmul %90, %88, %cst_72 {dimension_numbers = #tpu.dot_dimension_numbers<[1], [0], [0], [1], [0, 0, 1, 1], [], []>} : vector<20x20xf32>, vector<20x128xf32>, vector<20x128xf32> -> vector<20x128xf32>
    %c1_73 = arith.constant 1 : index
    %c0_74 = arith.constant 0 : index
    %c0_75 = arith.constant 0 : index
    %92 = vector.load %arg5[%c1_73, %c0_74, %c0_75] : memref<11x20x1xf32, #tpu.memory_space<vmem>>, vector<1x20x1xf32>
    %93 = vector.shape_cast %92 : vector<1x20x1xf32> to vector<20x1xf32>
    %94 = vector.broadcast %93 : vector<20x1xf32> to vector<20x128xf32>
    %95 = arith.addf %91, %94 : vector<20x128xf32>
    %c0_76 = arith.constant 0 : index
    %c0_77 = arith.constant 0 : index
    %c0_78 = arith.constant 0 : index
    %96 = vector.load %arg9[%c0_76, %c0_77, %c0_78] : memref<3x20x128xf32, #tpu.memory_space<vmem>>, vector<1x20x128xf32>
    %97 = vector.shape_cast %96 : vector<1x20x128xf32> to vector<20x128xf32>
    %98 = arith.addf %95, %97 : vector<20x128xf32>
    %99 = math.tanh %98 : vector<20x128xf32>
    %c2_79 = arith.constant 2 : index
    %c0_80 = arith.constant 0 : index
    %c0_81 = arith.constant 0 : index
    %100 = vector.load %arg4[%c2_79, %c0_80, %c0_81] : memref<11x20x20xf32, #tpu.memory_space<vmem>>, vector<1x20x20xf32>
    %101 = vector.shape_cast %100 : vector<1x20x20xf32> to vector<20x20xf32>
    %cst_82 = arith.constant dense<0.000000e+00> : vector<20x128xf32>
    %102 = tpu.matmul %101, %99, %cst_82 {dimension_numbers = #tpu.dot_dimension_numbers<[1], [0], [0], [1], [0, 0, 1, 1], [], []>} : vector<20x20xf32>, vector<20x128xf32>, vector<20x128xf32> -> vector<20x128xf32>
    %c2_83 = arith.constant 2 : index
    %c0_84 = arith.constant 0 : index
    %c0_85 = arith.constant 0 : index
    %103 = vector.load %arg5[%c2_83, %c0_84, %c0_85] : memref<11x20x1xf32, #tpu.memory_space<vmem>>, vector<1x20x1xf32>
    %104 = vector.shape_cast %103 : vector<1x20x1xf32> to vector<20x1xf32>
    %105 = vector.broadcast %104 : vector<20x1xf32> to vector<20x128xf32>
    %106 = arith.addf %102, %105 : vector<20x128xf32>
    %c1_86 = arith.constant 1 : index
    %c0_87 = arith.constant 0 : index
    %c0_88 = arith.constant 0 : index
    %107 = vector.load %arg9[%c1_86, %c0_87, %c0_88] : memref<3x20x128xf32, #tpu.memory_space<vmem>>, vector<1x20x128xf32>
    %108 = vector.shape_cast %107 : vector<1x20x128xf32> to vector<20x128xf32>
    %109 = arith.addf %106, %108 : vector<20x128xf32>
    %c0_89 = arith.constant 0 : index
    %c0_90 = arith.constant 0 : index
    %c0_91 = arith.constant 0 : index
    %110 = vector.load %arg9[%c0_89, %c0_90, %c0_91] : memref<3x20x128xf32, #tpu.memory_space<vmem>>, vector<1x20x128xf32>
    %111 = vector.shape_cast %110 : vector<1x20x128xf32> to vector<20x128xf32>
    %112 = vector.shape_cast %109 : vector<20x128xf32> to vector<1x20x128xf32>
    tpu.vector_store %arg9[%c0_89, %c0_90, %c0_91], %112 {strides = array<i32>} : memref<3x20x128xf32, #tpu.memory_space<vmem>>, vector<1x20x128xf32>,
    %113 = math.tanh %109 : vector<20x128xf32>
    %c3_92 = arith.constant 3 : index
    %c0_93 = arith.constant 0 : index
    %c0_94 = arith.constant 0 : index
    %114 = vector.load %arg4[%c3_92, %c0_93, %c0_94] : memref<11x20x20xf32, #tpu.memory_space<vmem>>, vector<1x20x20xf32>
    %115 = vector.shape_cast %114 : vector<1x20x20xf32> to vector<20x20xf32>
    %cst_95 = arith.constant dense<0.000000e+00> : vector<20x128xf32>
    %116 = tpu.matmul %115, %113, %cst_95 {dimension_numbers = #tpu.dot_dimension_numbers<[1], [0], [0], [1], [0, 0, 1, 1], [], []>} : vector<20x20xf32>, vector<20x128xf32>, vector<20x128xf32> -> vector<20x128xf32>
    %c3_96 = arith.constant 3 : index
    %c0_97 = arith.constant 0 : index
    %c0_98 = arith.constant 0 : index
    %117 = vector.load %arg5[%c3_96, %c0_97, %c0_98] : memref<11x20x1xf32, #tpu.memory_space<vmem>>, vector<1x20x1xf32>
    %118 = vector.shape_cast %117 : vector<1x20x1xf32> to vector<20x1xf32>
    %119 = vector.broadcast %118 : vector<20x1xf32> to vector<20x128xf32>
    %120 = arith.addf %116, %119 : vector<20x128xf32>
    %c2_99 = arith.constant 2 : index
    %c0_100 = arith.constant 0 : index
    %c0_101 = arith.constant 0 : index
    %121 = vector.load %arg9[%c2_99, %c0_100, %c0_101] : memref<3x20x128xf32, #tpu.memory_space<vmem>>, vector<1x20x128xf32>
    %122 = vector.shape_cast %121 : vector<1x20x128xf32> to vector<20x128xf32>
    %123 = arith.addf %120, %122 : vector<20x128xf32>
    %124 = math.tanh %123 : vector<20x128xf32>
    %c2_102 = arith.constant 2 : index
    %c0_103 = arith.constant 0 : index
    %c0_104 = arith.constant 0 : index
    %125 = vector.load %arg6[%c2_102, %c0_103, %c0_104] : memref<4x1x20xf32, #tpu.memory_space<vmem>>, vector<1x1x20xf32>
    %126 = vector.shape_cast %125 : vector<1x1x20xf32> to vector<1x20xf32>
    %cst_105 = arith.constant dense<0.000000e+00> : vector<1x128xf32>
    %127 = tpu.matmul %126, %124, %cst_105 {dimension_numbers = #tpu.dot_dimension_numbers<[1], [0], [0], [1], [0, 0, 1, 1], [], []>} : vector<1x20xf32>, vector<20x128xf32>, vector<1x128xf32> -> vector<1x128xf32>
    %c2_106 = arith.constant 2 : index
    %c0_107 = arith.constant 0 : index
    %c0_108 = arith.constant 0 : index
    %128 = vector.load %arg7[%c2_106, %c0_107, %c0_108] : memref<4x1x1xf32, #tpu.memory_space<vmem>>, vector<1x1x1xf32>
    %129 = vector.shape_cast %128 : vector<1x1x1xf32> to vector<1x1xf32>
    %130 = vector.broadcast %129 : vector<1x1xf32> to vector<1x128xf32>
    %131 = arith.addf %127, %130 : vector<1x128xf32>
    %132 = arith.addf %131, %80 : vector<1x128xf32>
    %c1_109 = arith.constant 1 : index
    %c0_110 = arith.constant 0 : index
    %c0_111 = arith.constant 0 : index
    %133 = vector.load %arg2[%c1_109, %c0_110, %c0_111] : memref<4x20x4xf32, #tpu.memory_space<vmem>>, vector<1x20x4xf32>
    %134 = vector.shape_cast %133 : vector<1x20x4xf32> to vector<20x4xf32>
    %cst_112 = arith.constant dense<0.000000e+00> : vector<20x128xf32>
    %135 = tpu.matmul %134, %0, %cst_112 {dimension_numbers = #tpu.dot_dimension_numbers<[1], [0], [0], [1], [0, 0, 1, 1], [], []>} : vector<20x4xf32>, vector<4x128xf32>, vector<20x128xf32> -> vector<20x128xf32>
    %c1_113 = arith.constant 1 : index
    %c0_114 = arith.constant 0 : index
    %c0_115 = arith.constant 0 : index
    %136 = vector.load %arg3[%c1_113, %c0_114, %c0_115] : memref<4x20x1xf32, #tpu.memory_space<vmem>>, vector<1x20x1xf32>
    %137 = vector.shape_cast %136 : vector<1x20x1xf32> to vector<20x1xf32>
    %138 = vector.broadcast %137 : vector<20x1xf32> to vector<20x128xf32>
    %139 = arith.addf %135, %138 : vector<20x128xf32>
    %140 = math.tanh %139 : vector<20x128xf32>
    %c0_116 = arith.constant 0 : index
    %c0_117 = arith.constant 0 : index
    %c0_118 = arith.constant 0 : index
    %141 = vector.load %arg4[%c0_116, %c0_117, %c0_118] : memref<11x20x20xf32, #tpu.memory_space<vmem>>, vector<1x20x20xf32>
    %142 = vector.shape_cast %141 : vector<1x20x20xf32> to vector<20x20xf32>
    %cst_119 = arith.constant dense<0.000000e+00> : vector<20x128xf32>
    %143 = tpu.matmul %142, %140, %cst_119 {dimension_numbers = #tpu.dot_dimension_numbers<[1], [0], [0], [1], [0, 0, 1, 1], [], []>} : vector<20x20xf32>, vector<20x128xf32>, vector<20x128xf32> -> vector<20x128xf32>
    %c0_120 = arith.constant 0 : index
    %c0_121 = arith.constant 0 : index
    %c0_122 = arith.constant 0 : index
    %144 = vector.load %arg5[%c0_120, %c0_121, %c0_122] : memref<11x20x1xf32, #tpu.memory_space<vmem>>, vector<1x20x1xf32>
    %145 = vector.shape_cast %144 : vector<1x20x1xf32> to vector<20x1xf32>
    %146 = vector.broadcast %145 : vector<20x1xf32> to vector<20x128xf32>
    %147 = arith.addf %143, %146 : vector<20x128xf32>
    %c0_123 = arith.constant 0 : index
    %c0_124 = arith.constant 0 : index
    %c0_125 = arith.constant 0 : index
    %148 = vector.load %arg9[%c0_123, %c0_124, %c0_125] : memref<3x20x128xf32, #tpu.memory_space<vmem>>, vector<1x20x128xf32>
    %149 = vector.shape_cast %148 : vector<1x20x128xf32> to vector<20x128xf32>
    %150 = arith.addf %147, %149 : vector<20x128xf32>
    %151 = math.tanh %150 : vector<20x128xf32>
    %c1_126 = arith.constant 1 : index
    %c0_127 = arith.constant 0 : index
    %c0_128 = arith.constant 0 : index
    %152 = vector.load %arg6[%c1_126, %c0_127, %c0_128] : memref<4x1x20xf32, #tpu.memory_space<vmem>>, vector<1x1x20xf32>
    %153 = vector.shape_cast %152 : vector<1x1x20xf32> to vector<1x20xf32>
    %cst_129 = arith.constant dense<0.000000e+00> : vector<1x128xf32>
    %154 = tpu.matmul %153, %151, %cst_129 {dimension_numbers = #tpu.dot_dimension_numbers<[1], [0], [0], [1], [0, 0, 1, 1], [], []>} : vector<1x20xf32>, vector<20x128xf32>, vector<1x128xf32> -> vector<1x128xf32>
    %c1_130 = arith.constant 1 : index
    %c0_131 = arith.constant 0 : index
    %c0_132 = arith.constant 0 : index
    %155 = vector.load %arg7[%c1_130, %c0_131, %c0_132] : memref<4x1x1xf32, #tpu.memory_space<vmem>>, vector<1x1x1xf32>
    %156 = vector.shape_cast %155 : vector<1x1x1xf32> to vector<1x1xf32>
    %157 = vector.broadcast %156 : vector<1x1xf32> to vector<1x128xf32>
    %158 = arith.addf %154, %157 : vector<1x128xf32>
    %159 = arith.addf %158, %132 : vector<1x128xf32>
    %c0_133 = arith.constant 0 : index
    %c0_134 = arith.constant 0 : index
    %c0_135 = arith.constant 0 : index
    %160 = vector.load %arg2[%c0_133, %c0_134, %c0_135] : memref<4x20x4xf32, #tpu.memory_space<vmem>>, vector<1x20x4xf32>
    %161 = vector.shape_cast %160 : vector<1x20x4xf32> to vector<20x4xf32>
    %cst_136 = arith.constant dense<0.000000e+00> : vector<20x128xf32>
    %162 = tpu.matmul %161, %0, %cst_136 {dimension_numbers = #tpu.dot_dimension_numbers<[1], [0], [0], [1], [0, 0, 1, 1], [], []>} : vector<20x4xf32>, vector<4x128xf32>, vector<20x128xf32> -> vector<20x128xf32>
    %c0_137 = arith.constant 0 : index
    %c0_138 = arith.constant 0 : index
    %c0_139 = arith.constant 0 : index
    %163 = vector.load %arg3[%c0_137, %c0_138, %c0_139] : memref<4x20x1xf32, #tpu.memory_space<vmem>>, vector<1x20x1xf32>
    %164 = vector.shape_cast %163 : vector<1x20x1xf32> to vector<20x1xf32>
    %165 = vector.broadcast %164 : vector<20x1xf32> to vector<20x128xf32>
    %166 = arith.addf %162, %165 : vector<20x128xf32>
    %167 = math.tanh %166 : vector<20x128xf32>
    %c0_140 = arith.constant 0 : index
    %c0_141 = arith.constant 0 : index
    %c0_142 = arith.constant 0 : index
    %168 = vector.load %arg6[%c0_140, %c0_141, %c0_142] : memref<4x1x20xf32, #tpu.memory_space<vmem>>, vector<1x1x20xf32>
    %169 = vector.shape_cast %168 : vector<1x1x20xf32> to vector<1x20xf32>
    %cst_143 = arith.constant dense<0.000000e+00> : vector<1x128xf32>
    %170 = tpu.matmul %169, %167, %cst_143 {dimension_numbers = #tpu.dot_dimension_numbers<[1], [0], [0], [1], [0, 0, 1, 1], [], []>} : vector<1x20xf32>, vector<20x128xf32>, vector<1x128xf32> -> vector<1x128xf32>
    %c0_144 = arith.constant 0 : index
    %c0_145 = arith.constant 0 : index
    %c0_146 = arith.constant 0 : index
    %171 = vector.load %arg7[%c0_144, %c0_145, %c0_146] : memref<4x1x1xf32, #tpu.memory_space<vmem>>, vector<1x1x1xf32>
    %172 = vector.shape_cast %171 : vector<1x1x1xf32> to vector<1x1xf32>
    %173 = vector.broadcast %172 : vector<1x1xf32> to vector<1x128xf32>
    %174 = arith.addf %170, %173 : vector<1x128xf32>
    %175 = arith.addf %174, %159 : vector<1x128xf32>
    %c0_147 = arith.constant 0 : index
    %c0_148 = arith.constant 0 : index
    %176 = vector.load %arg8[%c0_147, %c0_148] : memref<1x128xf32, #tpu.memory_space<vmem>>, vector<1x128xf32>
    tpu.vector_store %arg8[%c0_147, %c0_148], %175 {strides = array<i32>} : memref<1x128xf32, #tpu.memory_space<vmem>>, vector<1x128xf32>,
    return
  }
  func.func @transform_0(%arg0: i32) -> (i32, i32) {
    %c0_i32 = arith.constant 0 : i32
    %c0_i32_0 = arith.constant 0 : i32
    return %c0_i32, %arg0 : i32, i32
  }
  func.func @transform_1(%arg0: i32) -> (i32, i32, i32) {
    %c0_i32 = arith.constant 0 : i32
    %c0_i32_0 = arith.constant 0 : i32
    %c0_i32_1 = arith.constant 0 : i32
    %c0_i32_2 = arith.constant 0 : i32
    return %c0_i32, %c0_i32_0, %c0_i32_1 : i32, i32, i32
  }
  func.func @transform_2(%arg0: i32) -> (i32, i32, i32) {
    %c0_i32 = arith.constant 0 : i32
    %c0_i32_0 = arith.constant 0 : i32
    %c0_i32_1 = arith.constant 0 : i32
    %c0_i32_2 = arith.constant 0 : i32
    return %c0_i32, %c0_i32_0, %c0_i32_1 : i32, i32, i32
  }
  func.func @transform_3(%arg0: i32) -> (i32, i32, i32) {
    %c0_i32 = arith.constant 0 : i32
    %c0_i32_0 = arith.constant 0 : i32
    %c0_i32_1 = arith.constant 0 : i32
    %c0_i32_2 = arith.constant 0 : i32
    return %c0_i32, %c0_i32_0, %c0_i32_1 : i32, i32, i32
  }
  func.func @transform_4(%arg0: i32) -> (i32, i32, i32) {
    %c0_i32 = arith.constant 0 : i32
    %c0_i32_0 = arith.constant 0 : i32
    %c0_i32_1 = arith.constant 0 : i32
    %c0_i32_2 = arith.constant 0 : i32
    return %c0_i32, %c0_i32_0, %c0_i32_1 : i32, i32, i32
  }
  func.func @transform_5(%arg0: i32) -> (i32, i32, i32) {
    %c0_i32 = arith.constant 0 : i32
    %c0_i32_0 = arith.constant 0 : i32
    %c0_i32_1 = arith.constant 0 : i32
    %c0_i32_2 = arith.constant 0 : i32
    return %c0_i32, %c0_i32_0, %c0_i32_1 : i32, i32, i32
  }
  func.func @transform_6(%arg0: i32) -> (i32, i32, i32) {
    %c0_i32 = arith.constant 0 : i32
    %c0_i32_0 = arith.constant 0 : i32
    %c0_i32_1 = arith.constant 0 : i32
    %c0_i32_2 = arith.constant 0 : i32
    return %c0_i32, %c0_i32_0, %c0_i32_1 : i32, i32, i32
  }
  func.func @transform_7(%arg0: i32) -> (i32, i32) {
    %c0_i32 = arith.constant 0 : i32
    %c0_i32_0 = arith.constant 0 : i32
    return %c0_i32, %arg0 : i32, i32
  }
}

</mosaic_0001>

<bundles_post_ra>
// kernel: tpu_custom_call.1
= control target key start
LH: loop header
LB: loop body
LE: loop exit
PB: predicated region body
PF: predicated region fallthrough
CT: control target
= control target key end

     0   :  { %12 = vsyncpa [#allocation4], 0  ;;  %s3937_s0 = inlined_call_operand.vmem [shape: f32[4,256], index: 0, kind: input, shape index: {}]   ;;  %s3938_s1 = inlined_call_operand.vmem [shape: f32[4,20,4], index: 1, kind: input, shape index: {}]   ;;  %s3939_s2 = inlined_call_operand.vmem [shape: f32[4,20,1], index: 2, kind: input, shape index: {}]   ;;  %s3940_s3 = inlined_call_operand.vmem [shape: f32[11,20,20], index: 3, kind: input, shape index: {}]   ;;  %s3941_s4 = inlined_call_operand.vmem [shape: f32[11,20,1], index: 4, kind: input, shape index: {}]   ;;  %s3942_s5 = inlined_call_operand.vmem [shape: f32[4,1,20], index: 5, kind: input, shape index: {}]   ;;  %s3943_s6 = inlined_call_operand.vmem [shape: f32[4,1,1], index: 6, kind: input, shape index: {}]   ;;  %s3944_s7 = inlined_call_operand.hbm [shape: f32[1,256], index: 7, kind: output, shape index: {}]  }
   0x1   :  { %14 = vsyncpa [#allocation4 + $0x1], 0  ;;  %s3302_s24 = smov 0   ;;  %s3304_s25 = smov 0  }
   0x2   :  { %s3306_s26 = smov 0   ;;  %s3308_s27 = smov 0  }
   0x3 LB: > { %s3323_s28 = sadd.s32 4294967295, %s3255_s27   ;;  %s2498_s29 = sadd.s32 4294967294, %s3255_s27   ;;  %s3255_s27 = sphi %s3308_s27, %s3950_s27   ;;  %s3251_s26 = sphi %s3306_s26, %s3949_s26   ;;  %s3247_s25 = sphi %s3304_s25, %s3948_s25   ;;  %s3243_s24 = sphi %s3302_s24, %s3947_s24  }
   0x4   : > { %s3327_s30 = sadd.s32 1, %s3255_s27   ;;  %s179_s8 = sadd.s32 1, %s3251_s26 }
   0x5   : > { %s176_s9 = ssub.s32 %s3255_s27, %s3327_s30  ;;  %p189_p0 = scmp.ne.s32.totalorder %s3251_s26, %s3247_s25 }
   0x6   : > { %p177_p1 = scmp.eq.s32.totalorder %s176_s9, 0  ;;  %p190_p2 = scmp.eq.s32.totalorder %s3323_s28, 1 }
   0x7   : > { %p195_p3 = scmp.ne.s32.totalorder %s3247_s25, %s3243_s24  ;;  %p196_p4 = scmp.eq.s32.totalorder %s2498_s29, 1 }
   0x8   : > { %s3338_s10 = scalar_select %p177_p1, %s3251_s26, %s179_s8  }
   0x9   : > { %p3340_p5 = por %p190_p2, %p189_p0  ;;  %p3344_p6 = por %p196_p4, %p195_p3 }
   0xa   : > { %p2501_p7 = scmp.ge.s32.totalorder %s3255_s27, 1  ;;  %p239_p8 = scmp.lt.s32.totalorder %s3255_s27, 3 }
   0xc   : > { %p240_p9 = pnand %p2501_p7, %p239_p8 }
   0xd   : > { %v2506_v0 = vld [vmem:[%s3939_s2 + $0x48] sm:$0xff] (!%p240_p9)  ;;  %v2508_v1 = vld [vmem:[%s3939_s2 + $0x58] sm:$0xf] (!%p240_p9)  ;;  %v3257_v2 = vmov (!%p240_p9), 0   ;;  %p269_p10 = scmp.lt.s32.totalorder (!%p240_p9), %s3323_s28, 1  ;;  %v3258_v3 = vmov (!%p240_p9), 0.0  }
   0xe   : > { %243 = sbr.rel (%p240_p9) target bundleno = 3353 (0xd19), region = 48  ;;  %3101 = vset.pattern.permute.xlu0 (!%p240_p9), %v3257_v2  ;;  %3102 = vset.pattern.permute.xlu1 (!%p240_p9), %v3257_v2  ;;  %v2507_v4 = vld [vmem:[%s3939_s2 + $0x50] sm:$0xff] (!%p240_p9)  ;;  %vm3259_vm0 = vmmov (!%p240_p9), 0   ;;  %v2516_v5 = vld [vmem:[%s3941_s4 + $0x60] sm:$0xff] (!%p240_p9)  ;;  %vm307_vm1 = vcmask (!%p240_p9), 1043456   ;;  %v2503_v6 = vld [vmem:[%s3938_s1 + $0x48] sm:$0xff] (!%p240_p9) }
   0xf   : > { %284 = vperm.xlu0 (!%p240_p9), %3101, %v2506_v0   ;;  %294 = vperm.xlu1 (!%p240_p9), %3102, %v2508_v1   ;;  %vm297_vm2 = vcmask (!%p240_p9), 31744   ;;  %v2505_v7 = vld [vmem:[%s3938_s1 + $0x58] sm:$0xf] (!%p240_p9)  ;;  %v2517_v9 = vld [vmem:[%s3941_s4 + $0x68] sm:$0xff] (!%p240_p9)  ;;  %v2518_v10 = vld [vmem:[%s3941_s4 + $0x70] sm:$0xf] (!%p240_p9) }
  0x10   : > { %2756 = vmatprep.subr.mxu0 (!%p240_p9), %v3258_v3  ;;  %2758 = vmatprep.mubr.msk.f32.mxu0 (!%p240_p9), %vm3259_vm0, %v3258_v3  ;;  %v2504_v11 = vld [vmem:[%s3938_s1 + $0x50] sm:$0xff] (!%p240_p9)  ;;  %v2526_v12 = vld [vmem:[%s3941_s4 + $0x78] sm:$0xff] (!%p240_p9)  ;;  %v2527_v13 = vld [vmem:[%s3941_s4 + $0x80] sm:$0xff] (!%p240_p9)  ;;  %v3260_v55 = vmov (!%p240_p9), 0.0|0.0   ;;  %vm417_vm3 = vcmask (!%p240_p9), 162816   ;;  %s267_s18 = sand.u32 (!%p240_p9), 1, %s3247_s25  }
  0x11   : > { %3046 = vmatprep.subr.mxu1 (!%p240_p9), %v3258_v3  ;;  %2764 = vmatprep.mubr.msk.f32.mxu1 (!%p240_p9), %vm3259_vm0, %v3258_v3  ;;  %v2528_v14 = vld [vmem:[%s3941_s4 + $0x88] sm:$0xf] (!%p240_p9)  ;;  %v2536_v15 = vld [vmem:[%s3941_s4 + $0x90] sm:$0xff] (!%p240_p9)  ;;  %v2537_v16 = vld [vmem:[%s3941_s4 + $0x98] sm:$0xff] (!%p240_p9)  ;;  %s268_s20 = scalar_lea.vmem (!%p240_p9), [#allocation3], %s267_s18 }
  0x12   : > { %v2538_v17 = vld [vmem:[%s3941_s4 + $0xa0] sm:$0xf] (!%p240_p9)  ;;  %v2546_v18 = vld [vmem:[%s3941_s4 + $0xa8] sm:$0xff] (!%p240_p9)  ;;  %v2547_v19 = vld [vmem:[%s3941_s4 + $0xb0] sm:$0xff] (!%p240_p9)  ;;  %s2443_s21 = sshll.u32 (!%p240_p9), %s268_s20, 4  ;;  %s3897_s21 = int_to_ptr.vmem [resolvable:$true] %s2443_s21 }
  0x13   : > { %289 = vperm.xlu0 (!%p240_p9), %3101, %v2507_v4   ;;  %404 = vperm.xlu1 (!%p240_p9), %3102, %v2516_v5   ;;  %v2548_v20 = vld [vmem:[%s3941_s4 + $0xb8] sm:$0xf] (!%p240_p9)  ;;  %v2556_v21 = vld [vmem:[%s3941_s4 + $0xc0] sm:$0xff] (!%p240_p9)  ;;  %v2557_v22 = vld [vmem:[%s3941_s4 + $0xc8] sm:$0xff] (!%p240_p9)  ;;  %s3193_s9 = scalar_lea.vmem (!%p240_p9), %s3897_s21, 16 }
  0x14   : > { %v2558_v23 = vld [vmem:[%s3941_s4 + $0xd0] sm:$0xf] (!%p240_p9)  ;;  %v2566_v24 = vld [vmem:[%s3941_s4 + $0xd8] sm:$0xff] (!%p240_p9)  ;;  %v2567_v25 = vld [vmem:[%s3941_s4 + $0xe0] sm:$0xff] (!%p240_p9)  ;;  %p3194_p11 = scmp.ne.s32.totalorder (!%p240_p9), %s3897_s21, %s3193_s9 }
  0x15   : > { %s270_s19 = scalar_select %p269_p10, %s3323_s28, 1  ;;  %v2568_v26 = vld [vmem:[%s3941_s4 + $0xe8] sm:$0xf]  ;;  %v2576_v27 = vld [vmem:[%s3941_s4 + $0xf0] sm:$0xff]  ;;  %v2577_v28 = vld [vmem:[%s3941_s4 + $0xf8] sm:$0xff] }
  0x16   : > { %v2578_v29 = vld [vmem:[%s3941_s4 + $0x100] sm:$0xf]  ;;  %v2590_v30 = vld [vmem:[%s3939_s2 + $0x30] sm:$0xff]  ;;  %v2591_v31 = vld [vmem:[%s3939_s2 + $0x38] sm:$0xff]  ;;  %p3195_p12 = pnand %p3194_p11, %p3340_p5 }
  0x17   : > { %s2502_s22 = sshll.u32 %s270_s19, 2  ;;  %409 = vperm.xlu0 %3101, %v2517_v9   ;;  %414 = vperm.xlu1 %3102, %v2518_v10   ;;  %v2592_v32 = vld [vmem:[%s3939_s2 + $0x40] sm:$0xf]  ;;  %v2600_v33 = vld [vmem:[%s3941_s4 + $0x18] sm:$0xff]  ;;  %v2602_v35 = vld [vmem:[%s3941_s4 + $0x28] sm:$0xf] }
  0x18   : > { %s272_s8 = scalar_lea.vmem %s3937_s0, %s2502_s22  ;;  %v2601_v34 = vld [vmem:[%s3941_s4 + $0x20] sm:$0xff]  ;;  %v2610_v36 = vld [vmem:[%s3941_s4 + $0x30] sm:$0xff]  ;;  %v2611_v37 = vld [vmem:[%s3941_s4 + $0x38] sm:$0xff]  ;;  %s2655_s19 = sshll.u32 %s3323_s28, 4 }
  0x19   : > { %v3379_v8 = vld [vmem:[%s272_s8] sm:$0xf]  ;;  %v2620_v39 = vld [vmem:[%s3941_s4 + $0x48] sm:$0xff]  ;;  %v2621_v40 = vld [vmem:[%s3941_s4 + $0x50] sm:$0xff]  ;;  %s3895_s29 = scalar_lea.hbm %s3944_s7, %s2655_s19  ;;  %s2431_s8 = scalar_lea.sflag [#allocation4], %s267_s18 }
  0x1a   : > { %2757 = vmatpush3.msk.msra.mxu0 %vm307_vm1, %v3379_v8  ;;  %3047 = vmatpush3.msk.msra.mxu1 %vm307_vm1, %v3379_v8  ;;  %v2612_v38 = vld [vmem:[%s3941_s4 + $0x40] sm:$0xf]  ;;  %v2622_v41 = vld [vmem:[%s3941_s4 + $0x58] sm:$0xf]  ;;  %v2636_v44 = vld [vmem:[%s3939_s2 + $0x28] sm:$0xf]  ;;  %p3196_p13 = pneg %p3195_p12 }
  0x1b   : > { %2759 = vmatmul.mubr.msk.f32.vlgmr.msra.gmra.mrb[0].mxu0 %vm297_vm2, %v2503_v6  ;;  %2765 = vmatmul.mubr.msk.f32.vlgmr.msra.gmra.mrb[0].mxu1 %vm297_vm2, %v2505_v7  ;;  %v2634_v42 = vld [vmem:[%s3939_s2 + $0x18] sm:$0xff]  ;;  %v2635_v43 = vld [vmem:[%s3939_s2 + $0x20] sm:$0xff]  ;;  %v2020_v46 = vld [vmem:[%s3941_s4 + $0x8] sm:$0xff]  ;;  %s3261_s28 = smov [#allocation3]  }
  0x1c   : > { %2761 = vmatprep.mubr.msk.f32.mxu0 %vm3259_vm0, %v3258_v3  ;;  %2773 = vmatprep.mubr.msk.f32.mxu1 %vm3259_vm0, %v3258_v3  ;;  %v2019_v45 = vld [vmem:[%s3941_s4] sm:$0xff]  ;;  %v2021_v47 = vld [vmem:[%s3941_s4 + $0x10] sm:$0xf]  ;;  %v2232_v49 = vld [vmem:[%s3939_s2 + $0x8] sm:$0xff]  ;;  %s3197_s13 = sshll.u32 %s3261_s28, 4  ;;  %s3198_s13 = int_to_ptr.vmem [resolvable:$false] %s3197_s13 }
  0x1d   : > { %523 = vperm.xlu0 %3101, %v2526_v12   ;;  %528 = vperm.xlu1 %3102, %v2527_v13   ;;  %v2231_v48 = vld [vmem:[%s3939_s2] sm:$0xff]  ;;  %v2233_v50 = vld [vmem:[%s3939_s2 + $0x10] sm:$0xf]  ;;  %s3199_s14 = scalar_lea.vmem %s3198_s13, 32  ;;  %p3200_p0 = scmp.lt.s32.totalorder %s3897_s21, %s3198_s13 }
  0x1e   : > { %v2584_v51 = vld [vmem:[%s3943_s6 + $0x3] sm:$0x1]  ;;  %v2628_v52 = vld [vmem:[%s3943_s6 + $0x2] sm:$0x1]  ;;  %v2646_v53 = vld [vmem:[%s3943_s6 + $0x1] sm:$0x1]  ;;  %3001 = vmatprep.subr.bf16.mxu1 %v3260_v55  ;;  %3004 = vmatprep.subr.bf16.mxu0 %v3260_v55  ;;  %p3201_p1 = scmp.lt.s32.totalorder %s3199_s14, %s3193_s9 }
  0x1f   : > { %2762 = vmatmul.mubr.msk.f32.gmra.mrb[2].mxu0 %vm297_vm2, %v2504_v11  ;;  %v2342_v54 = vld [vmem:[%s3943_s6] sm:$0x1]  ;;  %v2514_v11 = vld [vmem:[%s3940_s3 + $0x68] sm:$0xff]  ;;  %v2515_v12 = vld [vmem:[%s3940_s3 + $0x70] sm:$0xf] }
  0x20   : > { %2788 = vmatprep.mubr.msk.f32.mxu0 %vm3259_vm0, %v3258_v3  ;;  %v2513_v10 = vld [vmem:[%s3940_s3 + $0x60] sm:$0xff]  ;;  %p3202_p2 = por %p3201_p1, %p3200_p0 }
  0x21   : > { %533 = vperm.xlu0 %3101, %v2528_v14   ;;  %644 = vperm.xlu1 %3102, %v2536_v15  }
  0x22   : > { %p3203_p3 = pnand %p3202_p2, %p3196_p13 }
  0x25   : > { %649 = vperm.xlu0 %3101, %v2537_v16   ;;  %654 = vperm.xlu1 %3102, %v2538_v17  }
  0x29   : > { %762 = vperm.xlu0 %3101, %v2546_v18   ;;  %767 = vperm.xlu1 %3102, %v2547_v19  }
  0x2d   : > { %772 = vperm.xlu0 %3101, %v2548_v20   ;;  %884 = vperm.xlu1 %3102, %v2556_v21  }
  0x31   : > { %889 = vperm.xlu0 %3101, %v2557_v22   ;;  %894 = vperm.xlu1 %3102, %v2558_v23  }
  0x35   : > { %1002 = vperm.xlu0 %3101, %v2566_v24   ;;  %1007 = vperm.xlu1 %3102, %v2567_v25  }
  0x39   : > { %1012 = vperm.xlu0 %3101, %v2568_v26   ;;  %1124 = vperm.xlu1 %3102, %v2576_v27  }
  0x3d   : > { %1129 = vperm.xlu0 %3101, %v2577_v28   ;;  %1134 = vperm.xlu1 %3102, %v2578_v29   ;;  %v2523_v28 = vld [vmem:[%s3940_s3 + $0x78] sm:$0xff] }
  0x41   : > { %1331 = vperm.xlu0 %3101, %v2590_v30   ;;  %1336 = vperm.xlu1 %3102, %v2591_v31   ;;  %v2524_v30 = vld [vmem:[%s3940_s3 + $0x80] sm:$0xff]  ;;  %v2525_v31 = vld [vmem:[%s3940_s3 + $0x88] sm:$0xf] }
  0x45   : > { %1341 = vperm.xlu0 %3101, %v2592_v32   ;;  %1446 = vperm.xlu1 %3102, %v2600_v33  }
  0x49   : > { %1451 = vperm.xlu0 %3101, %v2601_v34   ;;  %1456 = vperm.xlu1 %3102, %v2602_v35  }
  0x4d   : > { %1570 = vperm.xlu0 %3101, %v2610_v36   ;;  %1575 = vperm.xlu1 %3102, %v2611_v37  }
  0x51   : > { %1580 = vperm.xlu0 %3101, %v2612_v38   ;;  %1697 = vperm.xlu1 %3102, %v2620_v39  }
  0x55   : > { %1702 = vperm.xlu0 %3101, %v2621_v40   ;;  %1707 = vperm.xlu1 %3102, %v2622_v41  }
  0x59   : > { %1911 = vperm.xlu0 %3101, %v2634_v42   ;;  %1916 = vperm.xlu1 %3102, %v2635_v43  }
  0x5d   : > { %1921 = vperm.xlu0 %3101, %v2636_v44   ;;  %2024 = vperm.xlu1 %3102, %v2019_v45  }
  0x61   : > { %2029 = vperm.xlu0 %3101, %v2020_v46   ;;  %2034 = vperm.xlu1 %3102, %v2021_v47   ;;  %v2533_v47 = vld [vmem:[%s3940_s3 + $0x90] sm:$0xff] }
  0x65   : > { %2236 = vperm.xlu0 %3101, %v2231_v48   ;;  %2241 = vperm.xlu1 %3102, %v2232_v49   ;;  %v2534_v49 = vld [vmem:[%s3940_s3 + $0x98] sm:$0xff] }
  0x69   : > { %2246 = vperm.xlu0 %3101, %v2233_v50   ;;  %1238 = vperm.xlu1 %3102, %v2584_v51   ;;  %v2535_v50 = vld [vmem:[%s3940_s3 + $0xa0] sm:$0xf] }
  0x6d   : > { %1817 = vperm.xlu0 %3101, %v2628_v52   ;;  %2144 = vperm.xlu1 %3102, %v2646_v53  }
  0x71   : > { %2345 = vperm.xlu0 %3101, %v2342_v54  }
  0x8e   : > { %v285_v56 = vpop.permute.xlu0 %284  ;;  %v295_v2 = vpop.permute.xlu1 %294 }
  0x92   : > { %v290_v62 = vpop.permute.xlu0 %289  ;;  %v405_v14 = vpop.permute.xlu1 %404 }
  0x96   : > { %v410_v17 = vpop.permute.xlu0 %409  ;;  %v415_v21 = vpop.permute.xlu1 %414 }
  0x9c   : > { %v524_v33 = vpop.permute.xlu0 %523  ;;  %v529_v36 = vpop.permute.xlu1 %528 }
  0xa0   : > { %v534_v40 = vpop.permute.xlu0 %533  ;;  %v645_v52 = vpop.permute.xlu1 %644 }
  0xee   : > { %v377_v57 = vpop.f32.mrb[0].mxu0  ;;  %v387_v58 = vpop.f32.mrb[0].mxu1 }
  0xef   : > { %v2760_v59 = vpop.f32.mrb[1].mxu0  ;;  %v378_v60 = vadd.f32 %v377_v57, %v285_v56  ;;  %v2766_v61 = vpop.f32.mrb[1].mxu1  ;;  %v388_v4 = vadd.f32 %v387_v58, %v295_v2 }
  0xf0   : > { %v650_v56 = vpop.permute.xlu0 %649 }
  0xf1   : > { %3103 = vtanh.f32 %v378_v60  ;;  %v655_v60 = vpop.permute.xlu1 %654 }
  0xf2   : > { %v382_v63 = vpop.f32.mrb[2].mxu0 }
  0xf3   : > { %v383_v0 = vadd.f32 %v382_v63, %v290_v62  ;;  %v2763_v1 = vpop.f32.mrb[3].mxu0 }
  0xf5   : > { %3105 = vtanh.f32 %v383_v0 }
  0xf6   : > { %3107 = vtanh.f32 %v388_v4  ;;  %v2543_v4 = vld [vmem:[%s3940_s3 + $0xa8] sm:$0xff] }
  0xfb   : > { %v3104_v5 = vpop.eup %3103 }
  0xff   : > { %v3106_v6 = vpop.eup %3105 }
 0x100   : > { %v3002_v7 = vpack.c.bf16 %v3106_v6, %v3104_v5  ;;  %v3108_v9 = vpop.eup %3107  ;;  %v2544_v6 = vld [vmem:[%s3940_s3 + $0xb0] sm:$0xff] }
 0x102   : > { %3003 = vmatpush3.bf16.msra.mxu1 %v3002_v7  ;;  %v2545_v7 = vld [vmem:[%s3940_s3 + $0xb8] sm:$0xf] }
 0x103   : > { %2771 = vmatprep.subr.mxu1 %v3258_v3 }
 0x106   : > { %2772 = vmatpush3.msk.msra.mxu1 %vm307_vm1, %v3108_v9  ;;  %v763_v9 = vpop.permute.xlu0 %762 }
 0x107   : > { %2774 = vmatmul.mubr.msk.f32.vlgmr.msra.gmra.mrb[2].mxu1 %vm417_vm3, %v2513_v10  ;;  %3007 = vmatprep.subr.bf16.mxu1 %v3260_v55 }
 0x108   : > { %2776 = vmatprep.mubr.msk.f32.mxu1 %vm3259_vm0, %v3258_v3 }
 0x10b   : > { %2777 = vmatmul.mubr.msk.f32.gmra.mrb[4].mxu1 %vm417_vm3, %v2514_v11 }
 0x10c   : > { %2779 = vmatprep.mubr.msk.f32.mxu1 %vm3259_vm0, %v3258_v3 }
 0x10f   : > { %2780 = vmatmul.mubr.msk.f32.gmra.mrb[6].mxu1 %vm417_vm3, %v2515_v12 }
 0x110   : > { %2803 = vmatprep.mubr.msk.f32.mxu1 %vm3259_vm0, %v3258_v3 }
 0x1da   : > { %v496_v13 = vpop.f32.mrb[2].mxu1 }
 0x1db   : > { %v2775_v15 = vpop.f32.mrb[3].mxu1  ;;  %v497_v16 = vadd.f32 %v496_v13, %v405_v14  ;;  %v768_v13 = vpop.permute.xlu1 %767 }
 0x1dd   : > { %3109 = vtanh.f32 %v497_v16 }
 0x1de   : > { %v501_v18 = vpop.f32.mrb[4].mxu1 }
 0x1df   : > { %v502_v19 = vadd.f32 %v501_v18, %v410_v17  ;;  %v2778_v20 = vpop.f32.mrb[5].mxu1  ;;  %v773_v17 = vpop.permute.xlu0 %772 }
 0x1e1   : > { %3111 = vtanh.f32 %v502_v19 }
 0x1e2   : > { %v506_v22 = vpop.f32.mrb[6].mxu1 }
 0x1e3   : > { %v507_v23 = vadd.f32 %v506_v22, %v415_v21  ;;  %v2781_v24 = vpop.f32.mrb[7].mxu1 }
 0x1e4   : > { %v2553_v24 = vld [vmem:[%s3940_s3 + $0xc0] sm:$0xff] }
 0x1e5   : > { %3113 = vtanh.f32 %v507_v23 }
 0x1e7   : > { %v3110_v25 = vpop.eup %3109 }
 0x1eb   : > { %v3112_v26 = vpop.eup %3111 }
 0x1ec   : > { %v3005_v27 = vpack.c.bf16 %v3112_v26, %v3110_v25  ;;  %v2554_v26 = vld [vmem:[%s3940_s3 + $0xc8] sm:$0xff] }
 0x1ee   : > { %3006 = vmatpush3.bf16.msra.mxu0 %v3005_v27  ;;  %v2555_v27 = vld [vmem:[%s3940_s3 + $0xd0] sm:$0xf] }
 0x1ef   : > { %2786 = vmatprep.subr.mxu0 %v3258_v3  ;;  %v3114_v29 = vpop.eup %3113 }
 0x1f2   : > { %2787 = vmatpush3.msk.msra.mxu0 %vm307_vm1, %v3114_v29  ;;  %v885_v29 = vpop.permute.xlu1 %884 }
 0x1f3   : > { %2789 = vmatmul.mubr.msk.f32.vlgmr.msra.gmra.mrb[4].mxu0 %vm417_vm3, %v2523_v28  ;;  %3010 = vmatprep.subr.bf16.mxu0 %v3260_v55 }
 0x1f4   : > { %2791 = vmatprep.mubr.msk.f32.mxu0 %vm3259_vm0, %v3258_v3 }
 0x1f7   : > { %2792 = vmatmul.mubr.msk.f32.gmra.mrb[6].mxu0 %vm417_vm3, %v2524_v30 }
 0x1f8   : > { %2794 = vmatprep.mubr.msk.f32.mxu0 %vm3259_vm0, %v3258_v3 }
 0x1fb   : > { %2795 = vmatmul.mubr.msk.f32.gmra.mrb[8].mxu0 %vm417_vm3, %v2525_v31 }
 0x1fc   : > { %2818 = vmatprep.mubr.msk.f32.mxu0 %vm3259_vm0, %v3258_v3 }
 0x2c6   : > { %v614_v32 = vpop.f32.mrb[4].mxu0 }
 0x2c7   : > { %v2790_v34 = vpop.f32.mrb[5].mxu0  ;;  %v3576_v35 = vadd.f32 %v614_v32, %v524_v33  ;;  %v890_v32 = vpop.permute.xlu0 %889 }
 0x2c9   : > { %3115 = vtanh.f32 %v3576_v35 }
 0x2ca   : > { %v619_v37 = vpop.f32.mrb[6].mxu0 }
 0x2cb   : > { %v3578_v38 = vadd.f32 %v619_v37, %v529_v36  ;;  %v2793_v39 = vpop.f32.mrb[7].mxu0  ;;  %v895_v37 = vpop.permute.xlu1 %894 }
 0x2cd   : > { %3117 = vtanh.f32 %v3578_v38 }
 0x2ce   : > { %v624_v41 = vpop.f32.mrb[8].mxu0 }
 0x2cf   : > { %v625_v42 = vadd.f32 %v624_v41, %v534_v40  ;;  %v2796_v43 = vpop.f32.mrb[9].mxu0 }
 0x2d1   : > { %630 = vst [vmem:[#allocation2 + $0x10] sm:$0xf] %v625_v42  ;;  %3119 = vtanh.f32 %v625_v42 }
 0x2d3   : > { %v3116_v44 = vpop.eup %3115 }
 0x2d7   : > { %v3118_v45 = vpop.eup %3117 }
 0x2d8   : > { %v3008_v46 = vpack.c.bf16 %v3118_v45, %v3116_v44  ;;  %v2563_v45 = vld [vmem:[%s3940_s3 + $0xd8] sm:$0xff] }
 0x2da   : > { %3009 = vmatpush3.bf16.msra.mxu1 %v3008_v46 }
 0x2db   : > { %2801 = vmatprep.subr.mxu1 %v3258_v3  ;;  %v3120_v48 = vpop.eup %3119 }
 0x2de   : > { %2802 = vmatpush3.msk.msra.mxu1 %vm307_vm1, %v3120_v48  ;;  %v2565_v48 = vld [vmem:[%s3940_s3 + $0xe8] sm:$0xf] }
 0x2df   : > { %2804 = vmatmul.mubr.msk.f32.vlgmr.msra.gmra.mrb[8].mxu1 %vm417_vm3, %v2533_v47  ;;  %3013 = vmatprep.subr.bf16.mxu1 %v3260_v55  ;;  %v2564_v47 = vld [vmem:[%s3940_s3 + $0xe0] sm:$0xff] }
 0x2e0   : > { %2806 = vmatprep.mubr.msk.f32.mxu1 %vm3259_vm0, %v3258_v3 }
 0x2e3   : > { %2807 = vmatmul.mubr.msk.f32.gmra.mrb[10].mxu1 %vm417_vm3, %v2534_v49  ;;  %v1003_v49 = vpop.permute.xlu0 %1002 }
 0x2e4   : > { %2809 = vmatprep.mubr.msk.f32.mxu1 %vm3259_vm0, %v3258_v3 }
 0x2e7   : > { %2810 = vmatmul.mubr.msk.f32.gmra.mrb[12].mxu1 %vm417_vm3, %v2535_v50 }
 0x2e8   : > { %2833 = vmatprep.mubr.msk.f32.mxu1 %vm3259_vm0, %v3258_v3 }
 0x3b2   : > { %v735_v51 = vpop.f32.mrb[8].mxu1 }
 0x3b3   : > { %v2805_v53 = vpop.f32.mrb[9].mxu1  ;;  %v736_v54 = vadd.f32 %v735_v51, %v645_v52 }
 0x3b4   : > { %v1008_v53 = vpop.permute.xlu1 %1007 }
 0x3b5   : > { %3121 = vtanh.f32 %v736_v54 }
 0x3b6   : > { %v740_v57 = vpop.f32.mrb[10].mxu1 }
 0x3b7   : > { %v741_v58 = vadd.f32 %v740_v57, %v650_v56  ;;  %v2808_v59 = vpop.f32.mrb[11].mxu1 }
 0x3b9   : > { %3123 = vtanh.f32 %v741_v58  ;;  %v1013_v58 = vpop.permute.xlu0 %1012 }
 0x3ba   : > { %v745_v61 = vpop.f32.mrb[12].mxu1 }
 0x3bb   : > { %v746_v62 = vadd.f32 %v745_v61, %v655_v60  ;;  %v2811_v63 = vpop.f32.mrb[13].mxu1 }
 0x3bd   : > { %3125 = vtanh.f32 %v746_v62 }
 0x3bf   : > { %v3122_v0 = vpop.eup %3121 }
 0x3c3   : > { %v3124_v1 = vpop.eup %3123 }
 0x3c4   : > { %v3011_v2 = vpack.c.bf16 %v3124_v1, %v3122_v0  ;;  %v2573_v1 = vld [vmem:[%s3940_s3 + $0xf0] sm:$0xff] }
 0x3c6   : > { %3012 = vmatpush3.bf16.msra.mxu0 %v3011_v2 }
 0x3c7   : > { %2816 = vmatprep.subr.mxu0 %v3258_v3  ;;  %v3126_v5 = vpop.eup %3125 }
 0x3ca   : > { %2817 = vmatpush3.msk.msra.mxu0 %vm307_vm1, %v3126_v5  ;;  %v2575_v5 = vld [vmem:[%s3940_s3 + $0x100] sm:$0xf] }
 0x3cb   : > { %2819 = vmatmul.mubr.msk.f32.vlgmr.msra.gmra.mrb[10].mxu0 %vm417_vm3, %v2543_v4  ;;  %3016 = vmatprep.subr.bf16.mxu0 %v3260_v55  ;;  %v2574_v4 = vld [vmem:[%s3940_s3 + $0xf8] sm:$0xff] }
 0x3cc   : > { %2821 = vmatprep.mubr.msk.f32.mxu0 %vm3259_vm0, %v3258_v3 }
 0x3cf   : > { %2822 = vmatmul.mubr.msk.f32.gmra.mrb[12].mxu0 %vm417_vm3, %v2544_v6 }
 0x3d0   : > { %2824 = vmatprep.mubr.msk.f32.mxu0 %vm3259_vm0, %v3258_v3 }
 0x3d3   : > { %2825 = vmatmul.mubr.msk.f32.gmra.mrb[14].mxu0 %vm417_vm3, %v2545_v7  ;;  %v1125_v7 = vpop.permute.xlu1 %1124 }
 0x3d4   : > { %2848 = vmatprep.mubr.msk.f32.mxu0 %vm3259_vm0, %v3258_v3 }
 0x49e   : > { %v853_v10 = vpop.f32.mrb[10].mxu0 }
 0x49f   : > { %v3624_v11 = vadd.f32 %v853_v10, %v763_v9  ;;  %v2820_v12 = vpop.f32.mrb[11].mxu0 }
 0x4a0   : > { %v1130_v12 = vpop.permute.xlu0 %1129 }
 0x4a1   : > { %3127 = vtanh.f32 %v3624_v11 }
 0x4a2   : > { %v858_v14 = vpop.f32.mrb[12].mxu0 }
 0x4a3   : > { %v3626_v15 = vadd.f32 %v858_v14, %v768_v13  ;;  %v2823_v16 = vpop.f32.mrb[13].mxu0 }
 0x4a5   : > { %3129 = vtanh.f32 %v3626_v15 }
 0x4a6   : > { %v863_v18 = vpop.f32.mrb[14].mxu0 }
 0x4a7   : > { %v864_v19 = vadd.f32 %v863_v18, %v773_v17  ;;  %v2826_v20 = vpop.f32.mrb[15].mxu0  ;;  %v1135_v17 = vpop.permute.xlu1 %1134 }
 0x4a9   : > { %870 = vst [vmem:[#allocation2 + $0x28] sm:$0xf] %v864_v19  ;;  %3131 = vtanh.f32 %v864_v19 }
 0x4ab   : > { %v3128_v21 = vpop.eup %3127 }
 0x4af   : > { %v3130_v22 = vpop.eup %3129 }
 0x4b0   : > { %v3014_v23 = vpack.c.bf16 %v3130_v22, %v3128_v21 }
 0x4b2   : > { %3015 = vmatpush3.bf16.msra.mxu1 %v3014_v23 }
 0x4b3   : > { %2831 = vmatprep.subr.mxu1 %v3258_v3  ;;  %v3132_v25 = vpop.eup %3131 }
 0x4b6   : > { %2832 = vmatpush3.msk.msra.mxu1 %vm307_vm1, %v3132_v25 }
 0x4b7   : > { %2834 = vmatmul.mubr.msk.f32.vlgmr.msra.gmra.mrb[14].mxu1 %vm417_vm3, %v2553_v24  ;;  %3019 = vmatprep.subr.bf16.mxu1 %v3260_v55  ;;  %v2583_v24 = vld [vmem:[%s3942_s5 + $0x3] sm:$0x1] }
 0x4b8   : > { %2836 = vmatprep.mubr.msk.f32.mxu1 %vm3259_vm0, %v3258_v3 }
 0x4bb   : > { %2837 = vmatmul.mubr.msk.f32.gmra.mrb[16].mxu1 %vm417_vm3, %v2554_v26  ;;  %v2587_v26 = vld [vmem:[%s3938_s1 + $0x30] sm:$0xff] }
 0x4bc   : > { %2839 = vmatprep.mubr.msk.f32.mxu1 %vm3259_vm0, %v3258_v3 }
 0x4bf   : > { %2840 = vmatmul.mubr.msk.f32.gmra.mrb[18].mxu1 %vm417_vm3, %v2555_v27  ;;  %v2588_v27 = vld [vmem:[%s3938_s1 + $0x38] sm:$0xff] }
 0x4c0   : > { %2863 = vmatprep.mubr.msk.f32.mxu1 %vm3259_vm0, %v3258_v3 }
 0x58a   : > { %v975_v28 = vpop.f32.mrb[14].mxu1 }
 0x58b   : > { %v2835_v30 = vpop.f32.mrb[15].mxu1  ;;  %v976_v31 = vadd.f32 %v975_v28, %v885_v29  ;;  %v2589_v28 = vld [vmem:[%s3938_s1 + $0x40] sm:$0xf] }
 0x58c   : > { %v1332_v30 = vpop.permute.xlu0 %1331 }
 0x58d   : > { %3133 = vtanh.f32 %v976_v31 }
 0x58e   : > { %v980_v33 = vpop.f32.mrb[16].mxu1 }
 0x58f   : > { %v981_v34 = vadd.f32 %v980_v33, %v890_v32  ;;  %v2838_v36 = vpop.f32.mrb[17].mxu1  ;;  %v1337_v33 = vpop.permute.xlu1 %1336 }
 0x591   : > { %3135 = vtanh.f32 %v981_v34 }
 0x592   : > { %v985_v39 = vpop.f32.mrb[18].mxu1 }
 0x593   : > { %v986_v40 = vadd.f32 %v985_v39, %v895_v37  ;;  %v2841_v41 = vpop.f32.mrb[19].mxu1  ;;  %v1342_v39 = vpop.permute.xlu0 %1341 }
 0x595   : > { %3137 = vtanh.f32 %v986_v40 }
 0x597   : > { %v3134_v42 = vpop.eup %3133 }
 0x59b   : > { %v3136_v43 = vpop.eup %3135 }
 0x59c   : > { %v3017_v44 = vpack.c.bf16 %v3136_v43, %v3134_v42 }
 0x59e   : > { %3018 = vmatpush3.bf16.msra.mxu0 %v3017_v44 }
 0x59f   : > { %2846 = vmatprep.subr.mxu0 %v3258_v3  ;;  %v3138_v46 = vpop.eup %3137 }
 0x5a2   : > { %2847 = vmatpush3.msk.msra.mxu0 %vm307_vm1, %v3138_v46  ;;  %v2597_v46 = vld [vmem:[%s3940_s3 + $0x18] sm:$0xff] }
 0x5a3   : > { %2849 = vmatmul.mubr.msk.f32.vlgmr.msra.gmra.mrb[16].mxu0 %vm417_vm3, %v2563_v45  ;;  %3022 = vmatprep.subr.bf16.mxu0 %v3260_v55 }
 0x5a4   : > { %2851 = vmatprep.mubr.msk.f32.mxu0 %vm3259_vm0, %v3258_v3 }
 0x5a7   : > { %2852 = vmatmul.mubr.msk.f32.gmra.mrb[18].mxu0 %vm417_vm3, %v2564_v47 }
 0x5a8   : > { %2854 = vmatprep.mubr.msk.f32.mxu0 %vm3259_vm0, %v3258_v3 }
 0x5ab   : > { %2855 = vmatmul.mubr.msk.f32.gmra.mrb[20].mxu0 %vm417_vm3, %v2565_v48  ;;  %v2598_v48 = vld [vmem:[%s3940_s3 + $0x20] sm:$0xff] }
 0x5ac   : > { %2878 = vmatprep.mubr.msk.f32.mxu0 %vm3259_vm0, %v3258_v3 }
 0x676   : > { %v1093_v50 = vpop.f32.mrb[16].mxu0 }
 0x677   : > { %v3672_v51 = vadd.f32 %v1093_v50, %v1003_v49  ;;  %v2850_v52 = vpop.f32.mrb[17].mxu0  ;;  %v2599_v49 = vld [vmem:[%s3940_s3 + $0x28] sm:$0xf]  ;;  %v1447_v50 = vpop.permute.xlu1 %1446 }
 0x679   : > { %3139 = vtanh.f32 %v3672_v51 }
 0x67a   : > { %v1098_v54 = vpop.f32.mrb[18].mxu0 }
 0x67b   : > { %v3674_v56 = vadd.f32 %v1098_v54, %v1008_v53  ;;  %v2853_v57 = vpop.f32.mrb[19].mxu0 }
 0x67c   : > { %v1452_v57 = vpop.permute.xlu0 %1451 }
 0x67d   : > { %3141 = vtanh.f32 %v3674_v56 }
 0x67e   : > { %v1103_v59 = vpop.f32.mrb[20].mxu0 }
 0x67f   : > { %v1104_v60 = vadd.f32 %v1103_v59, %v1013_v58  ;;  %v2856_v61 = vpop.f32.mrb[21].mxu0 }
 0x681   : > { %1110 = vst [vmem:[#allocation2 + $0x40] sm:$0xf] %v1104_v60  ;;  %3143 = vtanh.f32 %v1104_v60 }
 0x683   : > { %v3140_v62 = vpop.eup %3139 }
 0x687   : > { %v3142_v63 = vpop.eup %3141 }
 0x688   : > { %v3020_v0 = vpack.c.bf16 %v3142_v63, %v3140_v62  ;;  %v1457_v63 = vpop.permute.xlu1 %1456 }
 0x68a   : > { %3021 = vmatpush3.bf16.msra.mxu1 %v3020_v0 }
 0x68b   : > { %2861 = vmatprep.subr.mxu1 %v3258_v3  ;;  %v3144_v2 = vpop.eup %3143 }
 0x68e   : > { %2862 = vmatpush3.msk.msra.mxu1 %vm307_vm1, %v3144_v2 }
 0x68f   : > { %2864 = vmatmul.mubr.msk.f32.vlgmr.msra.gmra.mrb[20].mxu1 %vm417_vm3, %v2573_v1  ;;  %3025 = vmatprep.subr.bf16.mxu1 %v3260_v55 }
 0x690   : > { %2866 = vmatprep.mubr.msk.f32.mxu1 %vm3259_vm0, %v3258_v3 }
 0x693   : > { %2867 = vmatmul.mubr.msk.f32.gmra.mrb[22].mxu1 %vm417_vm3, %v2574_v4  ;;  %v1553_v4 = vld [vmem:[#allocation2 + $0x10] sm:$0xf] }
 0x694   : > { %2869 = vmatprep.mubr.msk.f32.mxu1 %vm3259_vm0, %v3258_v3 }
 0x697   : > { %2870 = vmatmul.mubr.msk.f32.gmra.mrb[24].mxu1 %vm417_vm3, %v2575_v5 }
 0x698   : > { %2898 = vmatprep.mubr.msk.f32.mxu1 %vm3259_vm0, %v3258_v3 }
 0x762   : > { %v1215_v6 = vpop.f32.mrb[20].mxu1 }
 0x763   : > { %v2865_v9 = vpop.f32.mrb[21].mxu1  ;;  %v1216_v10 = vadd.f32 %v1215_v6, %v1125_v7 }
 0x765   : > { %3145 = vtanh.f32 %v1216_v10  ;;  %v2608_v10 = vld [vmem:[%s3940_s3 + $0x38] sm:$0xff] }
 0x766   : > { %v1220_v13 = vpop.f32.mrb[22].mxu1 }
 0x767   : > { %v1221_v14 = vadd.f32 %v1220_v13, %v1130_v12  ;;  %v2868_v16 = vpop.f32.mrb[23].mxu1  ;;  %v2609_v12 = vld [vmem:[%s3940_s3 + $0x40] sm:$0xf]  ;;  %v1571_v13 = vpop.permute.xlu0 %1570 }
 0x769   : > { %3147 = vtanh.f32 %v1221_v14 }
 0x76a   : > { %v1225_v18 = vpop.f32.mrb[24].mxu1 }
 0x76b   : > { %v1226_v19 = vadd.f32 %v1225_v18, %v1135_v17  ;;  %v2871_v20 = vpop.f32.mrb[25].mxu1 }
 0x76d   : > { %3149 = vtanh.f32 %v1226_v19  ;;  %v1576_v19 = vpop.permute.xlu1 %1575 }
 0x76f   : > { %v3146_v21 = vpop.eup %3145 }
 0x773   : > { %v3148_v22 = vpop.eup %3147 }
 0x774   : > { %v3023_v23 = vpack.c.bf16 %v3148_v22, %v3146_v21 }
 0x776   : > { %3024 = vmatpush3.bf16.msra.mxu0 %v3023_v23 }
 0x777   : > { %2876 = vmatprep.subr.mxu0 %v3258_v3  ;;  %v3150_v25 = vpop.eup %3149 }
 0x77a   : > { %2877 = vmatpush3.msk.msra.mxu0 %vm307_vm1, %v3150_v25 }
 0x77b   : > { %2879 = vmatmul.mubr.msk.f32.vlgmr.msra.gmra.mrb[22].mxu0 %vm417_vm3, %v2583_v24  ;;  %2881 = vmatprep.subr.mxu0 %v3258_v3  ;;  %v1581_v24 = vpop.permute.xlu0 %1580 }
 0x77c   : > { %2882 = vmatpush3.msk.msra.mxu0 %vm307_vm1, %v3379_v8  ;;  %2883 = vmatprep.mubr.msk.f32.mxu0 %vm3259_vm0, %v3258_v3 }
 0x77d   : > { %3028 = vmatprep.subr.bf16.mxu0 %v3260_v55 }
 0x77f   : > { %2884 = vmatmul.mubr.msk.f32.vlgmr.msra.gmra.mrb[24].mxu0 %vm297_vm2, %v2587_v26 }
 0x780   : > { %2886 = vmatprep.mubr.msk.f32.mxu0 %vm3259_vm0, %v3258_v3 }
 0x783   : > { %2887 = vmatmul.mubr.msk.f32.gmra.mrb[26].mxu0 %vm297_vm2, %v2588_v27 }
 0x784   : > { %2889 = vmatprep.mubr.msk.f32.mxu0 %vm3259_vm0, %v3258_v3 }
 0x787   : > { %2890 = vmatmul.mubr.msk.f32.gmra.mrb[28].mxu0 %vm297_vm2, %v2589_v28  ;;  %v1677_v28 = vld [vmem:[#allocation2 + $0x28] sm:$0xf] }
 0x788   : > { %2913 = vmatprep.mubr.msk.f32.mxu0 %vm3259_vm0, %v3258_v3 }
 0x852   : > { %v1419_v29 = vpop.f32.mrb[24].mxu0 }
 0x853   : > { %v2885_v31 = vpop.f32.mrb[25].mxu0  ;;  %v1420_v32 = vadd.f32 %v1419_v29, %v1332_v30 }
 0x855   : > { %3151 = vtanh.f32 %v1420_v32 }
 0x856   : > { %v1424_v34 = vpop.f32.mrb[26].mxu0 }
 0x857   : > { %v1425_v36 = vadd.f32 %v1424_v34, %v1337_v33  ;;  %v2888_v37 = vpop.f32.mrb[27].mxu0  ;;  %v2618_v33 = vld [vmem:[%s3940_s3 + $0x50] sm:$0xff]  ;;  %v2619_v34 = vld [vmem:[%s3940_s3 + $0x58] sm:$0xf] }
 0x858   : > { %v2632_v37 = vld [vmem:[%s3938_s1 + $0x20] sm:$0xff] }
 0x859   : > { %3153 = vtanh.f32 %v1425_v36  ;;  %v2631_v36 = vld [vmem:[%s3938_s1 + $0x18] sm:$0xff] }
 0x85a   : > { %v1429_v40 = vpop.f32.mrb[28].mxu0 }
 0x85b   : > { %v1430_v41 = vadd.f32 %v1429_v40, %v1342_v39  ;;  %v2891_v42 = vpop.f32.mrb[29].mxu0  ;;  %v2633_v39 = vld [vmem:[%s3938_s1 + $0x28] sm:$0xf]  ;;  %v2228_v40 = vld [vmem:[%s3938_s1] sm:$0xff] }
 0x85c   : > { %v1698_v42 = vpop.permute.xlu1 %1697 }
 0x85d   : > { %3155 = vtanh.f32 %v1430_v41  ;;  %v2230_v41 = vld [vmem:[%s3938_s1 + $0x10] sm:$0xf] }
 0x85f   : > { %v3152_v43 = vpop.eup %3151 }
 0x863   : > { %v3154_v44 = vpop.eup %3153 }
 0x864   : > { %v3026_v45 = vpack.c.bf16 %v3154_v44, %v3152_v43  ;;  %v1703_v44 = vpop.permute.xlu0 %1702 }
 0x866   : > { %3027 = vmatpush3.bf16.msra.mxu1 %v3026_v45 }
 0x867   : > { %2896 = vmatprep.subr.mxu1 %v3258_v3  ;;  %v3156_v47 = vpop.eup %3155 }
 0x86a   : > { %2897 = vmatpush3.msk.msra.mxu1 %vm307_vm1, %v3156_v47  ;;  %v1708_v47 = vpop.permute.xlu1 %1707 }
 0x86b   : > { %2899 = vmatmul.mubr.msk.f32.vlgmr.msra.gmra.mrb[26].mxu1 %vm417_vm3, %v2597_v46  ;;  %3031 = vmatprep.subr.bf16.mxu1 %v3260_v55 }
 0x86c   : > { %2901 = vmatprep.mubr.msk.f32.mxu1 %vm3259_vm0, %v3258_v3 }
 0x86f   : > { %2902 = vmatmul.mubr.msk.f32.gmra.mrb[28].mxu1 %vm417_vm3, %v2598_v48 }
 0x870   : > { %2904 = vmatprep.mubr.msk.f32.mxu1 %vm3259_vm0, %v3258_v3 }
 0x873   : > { %2905 = vmatmul.mubr.msk.f32.gmra.mrb[30].mxu1 %vm417_vm3, %v2599_v49 }
 0x874   : > { %2928 = vmatprep.mubr.msk.f32.mxu1 %vm3259_vm0, %v3258_v3 }
 0x93e   : > { %v1537_v52 = vpop.f32.mrb[26].mxu1 }
 0x93f   : > { %v1538_v53 = vadd.f32 %v1537_v52, %v1447_v50  ;;  %v2900_v54 = vpop.f32.mrb[27].mxu1 }
 0x941   : > { %v1554_v58 = vadd.f32 %v1538_v53, %v3576_v35  ;;  %v2607_v35 = vld [vmem:[%s3940_s3 + $0x30] sm:$0xff]  ;;  %v1912_v53 = vpop.permute.xlu0 %1911 }
 0x942   : > { %v1542_v59 = vpop.f32.mrb[28].mxu1 }
 0x943   : > { %v1543_v60 = vadd.f32 %v1542_v59, %v1452_v57  ;;  %v2903_v61 = vpop.f32.mrb[29].mxu1  ;;  %3157 = vtanh.f32 %v1554_v58 }
 0x944   : > { %v1804_v61 = vld [vmem:[#allocation2 + $0x40] sm:$0xf] }
 0x945   : > { %v1555_v62 = vadd.f32 %v1543_v60, %v3578_v38  ;;  %v1917_v60 = vpop.permute.xlu1 %1916 }
 0x946   : > { %v1547_v0 = vpop.f32.mrb[30].mxu1 }
 0x947   : > { %3159 = vtanh.f32 %v1555_v62  ;;  %v1548_v1 = vadd.f32 %v1547_v0, %v1457_v63  ;;  %v2906_v2 = vpop.f32.mrb[31].mxu1  ;;  %v1922_v0 = vpop.permute.xlu0 %1921 }
 0x949   : > { %v1556_v5 = vadd.f32 %v1553_v4, %v1548_v1 }
 0x94b   : > { %3161 = vtanh.f32 %v1556_v5 }
 0x94d   : > { %v3158_v6 = vpop.eup %3157 }
 0x951   : > { %v3160_v7 = vpop.eup %3159 }
 0x952   : > { %v3029_v9 = vpack.c.bf16 %v3160_v7, %v3158_v6 }
 0x954   : > { %3030 = vmatpush3.bf16.msra.mxu0 %v3029_v9  ;;  %v2030_v9 = vpop.permute.xlu0 %2029 }
 0x955   : > { %2911 = vmatprep.subr.mxu0 %v3258_v3  ;;  %v3162_v38 = vpop.eup %3161 }
 0x958   : > { %2912 = vmatpush3.msk.msra.mxu0 %vm307_vm1, %v3162_v38 }
 0x959   : > { %2914 = vmatmul.mubr.msk.f32.vlgmr.msra.gmra.mrb[30].mxu0 %vm417_vm3, %v2607_v35  ;;  %3034 = vmatprep.subr.bf16.mxu0 %v3260_v55 }
 0x95a   : > { %2916 = vmatprep.mubr.msk.f32.mxu0 %vm3259_vm0, %v3258_v3 }
 0x95d   : > { %2917 = vmatmul.mubr.msk.f32.gmra.mrb[32].mxu0 %vm417_vm3, %v2608_v10 }
 0x95e   : > { %2919 = vmatprep.mubr.msk.f32.mxu0 %vm3259_vm0, %v3258_v3 }
 0x961   : > { %2920 = vmatmul.mubr.msk.f32.gmra.mrb[34].mxu0 %vm417_vm3, %v2609_v12 }
 0x962   : > { %2943 = vmatprep.mubr.msk.f32.mxu0 %vm3259_vm0, %v3258_v3 }
 0xa2c   : > { %v1661_v14 = vpop.f32.mrb[30].mxu0 }
 0xa2d   : > { %v1662_v16 = vadd.f32 %v1661_v14, %v1571_v13  ;;  %v2915_v17 = vpop.f32.mrb[31].mxu0 }
 0xa2f   : > { %v3774_v18 = vadd.f32 %v1662_v16, %v3624_v11  ;;  %v2627_v16 = vld [vmem:[%s3942_s5 + $0x2] sm:$0x1] }
 0xa30   : > { %v1666_v20 = vpop.f32.mrb[32].mxu0 }
 0xa31   : > { %v1667_v21 = vadd.f32 %v1666_v20, %v1576_v19  ;;  %v2918_v22 = vpop.f32.mrb[33].mxu0  ;;  %3163 = vtanh.f32 %v3774_v18  ;;  %v2237_v19 = vpop.permute.xlu0 %2236 }
 0xa33   : > { %v3777_v23 = vadd.f32 %v1667_v21, %v3626_v15  ;;  %v2617_v15 = vld [vmem:[%s3940_s3 + $0x48] sm:$0xff] }
 0xa34   : > { %v1671_v25 = vpop.f32.mrb[34].mxu0 }
 0xa35   : > { %3165 = vtanh.f32 %v3777_v23  ;;  %v1672_v26 = vadd.f32 %v1671_v25, %v1581_v24  ;;  %v2921_v27 = vpop.f32.mrb[35].mxu0 }
 0xa37   : > { %v1680_v29 = vadd.f32 %v1677_v28, %v1672_v26 }
 0xa39   : > { %1683 = vst [vmem:[#allocation2 + $0x10] sm:$0xf] %v1680_v29  ;;  %3167 = vtanh.f32 %v1680_v29 }
 0xa3b   : > { %v3164_v11 = vpop.eup %3163 }
 0xa3f   : > { %v3166_v30 = vpop.eup %3165 }
 0xa40   : > { %v3032_v31 = vpack.c.bf16 %v3166_v30, %v3164_v11 }
 0xa42   : > { %3033 = vmatpush3.bf16.msra.mxu1 %v3032_v31  ;;  %v2016_v31 = vld [vmem:[%s3940_s3] sm:$0xff] }
 0xa43   : > { %2926 = vmatprep.subr.mxu1 %v3258_v3  ;;  %v3168_v32 = vpop.eup %3167 }
 0xa46   : > { %2927 = vmatpush3.msk.msra.mxu1 %vm307_vm1, %v3168_v32  ;;  %v2017_v32 = vld [vmem:[%s3940_s3 + $0x8] sm:$0xff] }
 0xa47   : > { %2929 = vmatmul.mubr.msk.f32.vlgmr.msra.gmra.mrb[32].mxu1 %vm417_vm3, %v2617_v15  ;;  %2946 = vmatprep.subr.mxu1 %v3258_v3 }
 0xa48   : > { %2931 = vmatprep.mubr.msk.f32.mxu1 %vm3259_vm0, %v3258_v3  ;;  %2947 = vmatpush3.msk.msra.mxu1 %vm307_vm1, %v3379_v8 }
 0xa49   : > { %2981 = vmatprep.subr.mxu1 %v3258_v3 }
 0xa4b   : > { %2932 = vmatmul.mubr.msk.f32.gmra.mrb[34].mxu1 %vm417_vm3, %v2618_v33 }
 0xa4c   : > { %2934 = vmatprep.mubr.msk.f32.mxu1 %vm3259_vm0, %v3258_v3 }
 0xa4f   : > { %2935 = vmatmul.mubr.msk.f32.gmra.mrb[36].mxu1 %vm417_vm3, %v2619_v34 }
 0xa50   : > { %2948 = vmatprep.mubr.msk.f32.mxu1 %vm3259_vm0, %v3258_v3 }
 0xa53   : > { %2949 = vmatmul.mubr.msk.f32.vlgmr.msra.gmra.mrb[38].mxu1 %vm297_vm2, %v2631_v36  ;;  %v2018_v36 = vld [vmem:[%s3940_s3 + $0x10] sm:$0xf] }
 0xa54   : > { %2951 = vmatprep.mubr.msk.f32.mxu1 %vm3259_vm0, %v3258_v3  ;;  %2982 = vmatpush3.msk.msra.mxu1 %vm307_vm1, %v3379_v8  ;;  %v2229_v8 = vld [vmem:[%s3938_s1 + $0x8] sm:$0xff] }
 0xa57   : > { %2952 = vmatmul.mubr.msk.f32.gmra.mrb[40].mxu1 %vm297_vm2, %v2632_v37 }
 0xa58   : > { %2954 = vmatprep.mubr.msk.f32.mxu1 %vm3259_vm0, %v3258_v3 }
 0xa5b   : > { %2955 = vmatmul.mubr.msk.f32.gmra.mrb[42].mxu1 %vm297_vm2, %v2633_v39 }
 0xa5c   : > { %2983 = vmatprep.mubr.msk.f32.mxu1 %vm3259_vm0, %v3258_v3 }
 0xa5f   : > { %2984 = vmatmul.mubr.msk.f32.vlgmr.msra.gmra.mrb[44].mxu1 %vm297_vm2, %v2228_v40 }
 0xa60   : > { %2986 = vmatprep.mubr.msk.f32.mxu1 %vm3259_vm0, %v3258_v3 }
 0xa63   : > { %2987 = vmatmul.mubr.msk.f32.gmra.mrb[46].mxu1 %vm297_vm2, %v2229_v8 }
 0xa64   : > { %2989 = vmatprep.mubr.msk.f32.mxu1 %vm3259_vm0, %v3258_v3 }
 0xa67   : > { %2990 = vmatmul.mubr.msk.f32.gmra.mrb[48].mxu1 %vm297_vm2, %v2230_v41 }
 0xb1a   : > { %v1788_v43 = vpop.f32.mrb[32].mxu1 }
 0xb1b   : > { %v1789_v45 = vadd.f32 %v1788_v43, %v1698_v42  ;;  %v2930_v46 = vpop.f32.mrb[33].mxu1 }
 0xb1d   : > { %v1805_v48 = vadd.f32 %v1789_v45, %v3672_v51  ;;  %v2025_v51 = vpop.permute.xlu1 %2024 }
 0xb1e   : > { %v1793_v49 = vpop.f32.mrb[34].mxu1 }
 0xb1f   : > { %v1794_v50 = vadd.f32 %v1793_v49, %v1703_v44  ;;  %v2933_v52 = vpop.f32.mrb[35].mxu1  ;;  %3169 = vtanh.f32 %v1805_v48  ;;  %v2131_v49 = vld [vmem:[#allocation2 + $0x10] sm:$0xf] }
 0xb20   : > { %v2247_v52 = vpop.permute.xlu0 %2246 }
 0xb21   : > { %v1806_v54 = vadd.f32 %v1794_v50, %v3674_v56  ;;  %v2035_v13 = vpop.permute.xlu1 %2034 }
 0xb22   : > { %v1798_v57 = vpop.f32.mrb[36].mxu1 }
 0xb23   : > { %3171 = vtanh.f32 %v1806_v54  ;;  %v1799_v58 = vadd.f32 %v1798_v57, %v1708_v47  ;;  %v2936_v59 = vpop.f32.mrb[37].mxu1 }
 0xb25   : > { %v1807_v62 = vadd.f32 %v1804_v61, %v1799_v58  ;;  %v2242_v24 = vpop.permute.xlu1 %2241  ;;  %v1241_v61 = vlaneseq }
 0xb26   : > { %v1999_v63 = vpop.f32.mrb[38].mxu1 }
 0xb27   : > { %v2950_v1 = vpop.f32.mrb[39].mxu1  ;;  %v2000_v2 = vadd.f32 %v1999_v63, %v1912_v53  ;;  %3173 = vtanh.f32 %v1807_v62  ;;  %v1242_v62 = vshrl.u32 %v1241_v61, 7 }
 0xb29   : > { %v3170_v7 = vpop.eup %3169  ;;  %3175 = vtanh.f32 %v2000_v2  ;;  %v1243_v63 = vsub.s32 0, %v1242_v62 }
 0xb2a   : > { %v2004_v4 = vpop.f32.mrb[40].mxu1 }
 0xb2b   : > { %v2005_v5 = vadd.f32 %v2004_v4, %v1917_v60  ;;  %v2953_v6 = vpop.f32.mrb[41].mxu1  ;;  %v2341_v60 = vld [vmem:[%s3942_s5] sm:$0x1] }
 0xb2d   : > { %v3172_v56 = vpop.eup %3171  ;;  %3177 = vtanh.f32 %v2005_v5 }
 0xb2e   : > { %v2009_v35 = vpop.f32.mrb[42].mxu1  ;;  %v3035_v38 = vpack.c.bf16 %v3172_v56, %v3170_v7 }
 0xb2f   : > { %v2010_v10 = vadd.f32 %v2009_v35, %v1922_v0  ;;  %v2956_v12 = vpop.f32.mrb[43].mxu1  ;;  %v1818_v0 = vpop.permute.xlu0 %1817 }
 0xb30   : > { %3036 = vmatpush3.bf16.msra.mxu0 %v3035_v38  ;;  %v1823_v2 = vrot.slane %v1818_v0, %v1243_v63 }
 0xb31   : > { %2941 = vmatprep.subr.mxu0 %v3258_v3  ;;  %v3174_v17 = vpop.eup %3173  ;;  %3179 = vtanh.f32 %v2010_v10 }
 0xb32   : > { %v2324_v14 = vpop.f32.mrb[44].mxu1 }
 0xb33   : > { %v2985_v20 = vpop.f32.mrb[45].mxu1  ;;  %v2325_v21 = vadd.f32 %v2324_v14, %v2237_v19  ;;  %v3176_v22 = vpop.eup %3175 }
 0xb34   : > { %2942 = vmatpush3.msk.msra.mxu0 %vm307_vm1, %v3174_v17  ;;  %v2346_v5 = vpop.permute.xlu0 %2345 }
 0xb35   : > { %3037 = vmatprep.subr.bf16.mxu0 %v3260_v55  ;;  %2944 = vmatmul.mubr.msk.f32.vlgmr.msra.gmra.mrb[22].mxu0 %vm417_vm3, %v2627_v16  ;;  %3181 = vtanh.f32 %v2325_v21  ;;  %v2351_v7 = vrot.slane %v2346_v5, %v1243_v63 }
 0xb36   : > { %v2329_v25 = vpop.f32.mrb[46].mxu1  ;;  %2963 = vmatprep.mubr.msk.f32.mxu0 %vm3259_vm0, %v3258_v3 }
 0xb37   : > { %v3178_v26 = vpop.eup %3177  ;;  %v2330_v27 = vadd.f32 %v2329_v25, %v2242_v24  ;;  %v2988_v28 = vpop.f32.mrb[47].mxu1 }
 0xb38   : > { %v3038_v29 = vpack.c.bf16 %v3178_v26, %v3176_v22 }
 0xb39   : > { %3183 = vtanh.f32 %v2330_v27 }
 0xb3a   : > { %3039 = vmatpush3.bf16.msra.mxu0 %v3038_v29  ;;  %v2334_v11 = vpop.f32.mrb[48].mxu1 }
 0xb3b   : > { %2961 = vmatprep.subr.mxu0 %v3258_v3  ;;  %v2991_v30 = vpop.f32.mrb[49].mxu1  ;;  %v3180_v15 = vpop.eup %3179  ;;  %v2335_v53 = vadd.f32 %v2334_v11, %v2247_v52 }
 0xb3e   : > { %2962 = vmatpush3.msk.msra.mxu0 %vm307_vm1, %v3180_v15 }
 0xb3f   : > { %2964 = vmatmul.mubr.msk.f32.vlgmr.msra.gmra.mrb[36].mxu0 %vm417_vm3, %v2016_v31  ;;  %3040 = vmatprep.subr.bf16.mxu0 %v3260_v55  ;;  %v3182_v33 = vpop.eup %3181 }
 0xb40   : > { %2966 = vmatprep.mubr.msk.f32.mxu0 %vm3259_vm0, %v3258_v3 }
 0xb43   : > { %v3184_v34 = vpop.eup %3183  ;;  %2967 = vmatmul.mubr.msk.f32.gmra.mrb[38].mxu0 %vm417_vm3, %v2017_v32 }
 0xb44   : > { %2969 = vmatprep.mubr.msk.f32.mxu0 %vm3259_vm0, %v3258_v3  ;;  %v3044_v37 = vpack.c.bf16 %v3184_v34, %v3182_v33 }
 0xb47   : > { %2970 = vmatmul.mubr.msk.f32.gmra.mrb[40].mxu0 %vm417_vm3, %v2018_v36 }
 0xb48   : > { %2978 = vmatprep.mubr.msk.f32.mxu0 %vm3259_vm0, %v3258_v3 }
 0xc12   : > { %v2115_v39 = vpop.f32.mrb[36].mxu0 }
 0xc13   : > { %v2116_v40 = vadd.f32 %v2115_v39, %v2025_v51  ;;  %v2965_v8 = vpop.f32.mrb[37].mxu0 }
 0xc15   : > { %v2132_v41 = vadd.f32 %v2116_v40, %v3774_v18  ;;  %v2645_v18 = vld [vmem:[%s3942_s5 + $0x1] sm:$0x1] }
 0xc16   : > { %v2120_v42 = vpop.f32.mrb[38].mxu0 }
 0xc17   : > { %v2121_v43 = vadd.f32 %v2120_v42, %v2030_v9  ;;  %v2968_v44 = vpop.f32.mrb[39].mxu0  ;;  %3185 = vtanh.f32 %v2132_v41 }
 0xc19   : > { %v2133_v45 = vadd.f32 %v2121_v43, %v3777_v23 }
 0xc1a   : > { %v2125_v46 = vpop.f32.mrb[40].mxu0 }
 0xc1b   : > { %3187 = vtanh.f32 %v2133_v45  ;;  %v2126_v47 = vadd.f32 %v2125_v46, %v2035_v13  ;;  %v2971_v48 = vpop.f32.mrb[41].mxu0 }
 0xc1d   : > { %v2134_v50 = vadd.f32 %v2131_v49, %v2126_v47 }
 0xc1f   : > { %3189 = vtanh.f32 %v2134_v50 }
 0xc20   : > { %3191 = vtanh.f32 %v2335_v53 }
 0xc21   : > { %v3186_v54 = vpop.eup %3185 }
 0xc25   : > { %v3188_v57 = vpop.eup %3187 }
 0xc26   : > { %v3041_v58 = vpack.c.bf16 %v3188_v57, %v3186_v54 }
 0xc28   : > { %3042 = vmatpush3.bf16.msra.mxu0 %v3041_v58 }
 0xc29   : > { %2976 = vmatprep.subr.mxu0 %v3258_v3  ;;  %v3190_v23 = vpop.eup %3189 }
 0xc2a   : > { %v3192_v59 = vpop.eup %3191 }
 0xc2c   : > { %2977 = vmatpush3.msk.msra.mxu0 %vm307_vm1, %v3190_v23 }
 0xc2d   : > { %2979 = vmatmul.mubr.msk.f32.vlgmr.msra.gmra.mrb[22].mxu0 %vm417_vm3, %v2645_v18  ;;  %3043 = vmatprep.subr.bf16.mxu0 %v3260_v55  ;;  %v1239_v55 = vpop.permute.xlu1 %1238 }
 0xc2e   : > { %3045 = vmatpush3.bf16.msra.mxu0 %v3044_v37  ;;  %2998 = vmatprep.mubr.msk.f32.mxu0 %vm3259_vm0, %v3258_v3  ;;  %v1244_v1 = vrot.slane %v1239_v55, %v1243_v63 }
 0xc2f   : > { %2996 = vmatprep.subr.mxu0 %v3258_v3 }
 0xc30   : > { %v3048_v3 = vadd.f32 %v1823_v2, %v1244_v1 }
 0xc31   : > { %v2145_v51 = vpop.permute.xlu1 %2144 }
 0xc32   : > { %2997 = vmatpush3.msk.msra.mxu0 %vm307_vm1, %v3192_v59  ;;  %v2150_v4 = vrot.slane %v2145_v51, %v1243_v63 }
 0xc34   : > { %v3049_v6 = vadd.f32 %v3048_v3, %v2150_v4 }
 0xc35   : > { %2999 = vmatmul.mubr.msk.f32.vlgmr.msra.gmra.mrb[22].mxu0 %vm417_vm3, %v2341_v60 }
 0xc36   : > { %v3050_v56 = vadd.f32 %v3049_v6, %v2351_v7 }
 0xd08   : > { %v2424_v9 = vpop.f32.mrb[22].mxu0 }
 0xd09   : > { %v3051_v35 = vadd.f32 %v3050_v56, %v2424_v9  ;;  %v3000_v38 = vpop.f32.mrb[23].mxu0 }
 0xd0b   : > { %2429 = vst [vmem:[%s268_s20] sm:$0x1] %v3051_v35 }
 0xd0c   : > { %3206 = shalt.err (!%p3203_p3)
}
 0xd0d   : > { %s3207_s15 = scalar_lea.hbm %s3895_s29, 16  ;;  %s3211_s18 = scalar_lea.hbm %s3944_s7, 32 }
 0xd0e   : > { %p3208_p4 = scmp.ne.s32.totalorder %s3895_s29, %s3207_s15  ;;  %p3212_p9 = scmp.lt.u32.totalorder %s3895_s29, %s3944_s7 }
 0xd0f   : > { %p3213_p10 = scmp.lt.u32.totalorder %s3211_s18, %s3207_s15  ;;  %p3215_p12 = scmp.lt.u32.totalorder %s3207_s15, %s3895_s29 }
 0xd10   : > { %p3209_p7 = pnand %p3208_p4, %p3340_p5 }
 0xd11   : > { %p3214_p11 = por %p3213_p10, %p3212_p9 }
 0xd12   : > { %p3210_p8 = pneg %p3209_p7 }
 0xd13   : > { %p3216_p13 = por %p3215_p12, %p3214_p11 }
 0xd15   : > { %p3217_p0 = pnand %p3216_p13, %p3210_p8 }
 0xd17   : > { %3220 = shalt.err (!%p3217_p0)
}
 0xd18   : > { %3058 = dma.vmem_to_hbm [thread:$0]  (%p3340_p5), %s3897_s21, 16, %s3895_s29, %s2431_s8  }
 0xd19 PF: > { %p3064_p1 = scmp.ge.s32.totalorder %s3255_s27, 2  ;;  %s2455_s22 = sand.u32 1, %s3243_s24  }
 0xd1a   : > { %s2456_s23 = scalar_lea.sflag [#allocation4], %s2455_s22 }
 0xd1b   : > { %p3061_p2 = pnand %p3064_p1, %p3344_p6 }
 0xd1d   : > { %3238 = dma.done.wait (!%p3061_p2), %s2456_s23, 16  }
 0xd1e   : > { %3240 = vsyncadd (!%p3061_p2), %s2456_s23, 4294967280  ;;  %p17_p3 = scmp.ge.s32.totalorder %s3327_s30, 4   ;;  %s3947_s24 = smov %s3247_s25 }
 0xd1f   : > { %s3948_s25 = smov %s3251_s26  ;;  %s3949_s26 = smov %s3338_s10 }
 0xd20   : > { %s3950_s27 = smov %s3327_s30  ;;  %19 = sbr.rel (!%p17_p3) target bundleno = 3 (0x3), region = 117 }
 0xd27   :  { %2460 = vsyncpa [#allocation4], 1 }
 0xd28   :  { %2462 = vsyncpa [#allocation4 + $0x1], 1 }

</bundles_post_ra>
